<compile_context>
chip_gen: v5e
topology: v5e:2x2
jax: 0.10.0
libtpu: 0.0.40
codegen_flags: <defaults>
</compile_context>

<pallas_src>
import functools
import math

import jax
import jax.numpy as jnp
from jax.experimental import pallas as pl
from jax.experimental.pallas import tpu as pltpu  # noqa: F401  (TPU backend)

# ---------------- model config (small, deterministic, synthetic) -------------
VOCAB = 100
MAX_POS = 64
TYPE_VOCAB = 2
HIDDEN = 32
NUM_LAYERS = 2
NUM_HEADS = 4
INTERMEDIATE = 64
NUM_LABELS = 2
LN_EPS = 1e-12

BATCH = 2
SEQ = 8


# ------------------------------ helpers ---------------------------------------
def _vspec(*shape):
    """Full-array VMEM block (no grid): whole operand is one lane-dense tile."""
    zeros = (0,) * len(shape)
    return pl.BlockSpec(shape, lambda: zeros)


def _layernorm(y, gamma, beta, eps):
    mean = jnp.mean(y, axis=-1, keepdims=True)
    var = jnp.mean(jnp.square(y - mean), axis=-1, keepdims=True)
    return (y - mean) * jax.lax.rsqrt(var + eps) * gamma + beta


# ---------------------------- fused whole-model kernel -------------------------
def _bert_kernel(x_ref, mask_ref, emb_g_ref, emb_b_ref,
                 qkv_w_ref, qkv_b_ref, ao_w_ref, ao_b_ref, aln_g_ref, aln_b_ref,
                 i_w_ref, i_b_ref, o_w_ref, o_b_ref, oln_g_ref, oln_b_ref,
                 p_w_ref, p_b_ref, c_w_ref, c_b_ref, o_ref,
                 *, num_layers, num_heads, batch, seq, scale, eps):
    """Whole BERT forward (post-embedding-gather) on one VMEM-resident slab.

    x_ref    : (B*S, H) f32 summed embeddings
    mask_ref : (B*S, B*S) f32 block-diagonal additive attention mask
    weights  : bf16 (stacked over layers), biases / LN params f32
    o_ref    : (B, NUM_LABELS) logits
    """
    hid = x_ref.shape[-1]
    dh = hid // num_heads

    # ---- embedding LayerNorm (f32) --------------------------------------------
    x = _layernorm(x_ref[...].astype(jnp.float32), emb_g_ref[...], emb_b_ref[...], eps)
    mask = mask_ref[...]                               # (B*S, B*S) additive

    for l in range(num_layers):                        # static unroll (2 layers)
        # ---- fused Q|K|V projection: one [H, 3H] bf16 matmul, x read once -----
        qkv = jnp.dot(x.astype(jnp.bfloat16), qkv_w_ref[l],
                      preferred_element_type=jnp.float32) + qkv_b_ref[l]

        # ---- multi-head self-attention over ALL B*S rows at once --------------
        # (cross-batch / padding keys are killed by the block-diagonal mask)
        heads = []
        for h in range(num_heads):
            q = qkv[:, h * dh:(h + 1) * dh].astype(jnp.bfloat16)
            k = qkv[:, hid + h * dh:hid + (h + 1) * dh].astype(jnp.bfloat16)
            v = qkv[:, 2 * hid + h * dh:2 * hid + (h + 1) * dh].astype(jnp.bfloat16)
            # s = q @ k^T  (trans_b via dot_general), scale + mask in f32 after.
            s = jax.lax.dot_general(q, k, (((1,), (1,)), ((), ())),
                                    preferred_element_type=jnp.float32) * scale
            s = s + mask
            s = s - jnp.max(s, axis=-1, keepdims=True)
            p = jnp.exp(s)
            # 1/sum on the EUP slot instead of a VALU divide.
            p = p * pl.reciprocal(jnp.sum(p, axis=-1, keepdims=True), approx=True)
            heads.append(jnp.dot(p.astype(jnp.bfloat16), v,
                                 preferred_element_type=jnp.float32))
        ctx = jnp.concatenate(heads, axis=-1)          # (B*S, H) heads back on lanes

        # ---- output projection + residual + LayerNorm (fused epilogue) --------
        y = jnp.dot(ctx.astype(jnp.bfloat16), ao_w_ref[l],
                    preferred_element_type=jnp.float32) + ao_b_ref[l] + x
        x = _layernorm(y, aln_g_ref[l], aln_b_ref[l], eps)

        # ---- FFN: matmul -> GELU -> matmul -> residual -> LayerNorm -----------
        hmid = jnp.dot(x.astype(jnp.bfloat16), i_w_ref[l],
                       preferred_element_type=jnp.float32) + i_b_ref[l]
        # TODO(synk): HF BERT default is exact erf-GELU; tanh-approx GELU used here.
        hmid = jax.nn.gelu(hmid, approximate=True)
        y = jnp.dot(hmid.astype(jnp.bfloat16), o_w_ref[l],
                    preferred_element_type=jnp.float32) + o_b_ref[l] + x
        x = _layernorm(y, oln_g_ref[l], oln_b_ref[l], eps)

    # ---- pooler (tanh dense on [CLS] rows) + classifier ------------------------
    cls = jnp.concatenate([x[b * seq:b * seq + 1, :] for b in range(batch)], axis=0)
    pooled = jnp.tanh(jnp.dot(cls.astype(jnp.bfloat16), p_w_ref[...],
                              preferred_element_type=jnp.float32) + p_b_ref[...])
    logits = jnp.dot(pooled.astype(jnp.bfloat16), c_w_ref[...],
                     preferred_element_type=jnp.float32) + c_b_ref[...]
    o_ref[...] = logits.astype(o_ref.dtype)


# ---------------------------- parameter init ----------------------------------
def init_params(key):
    std = 0.02
    keys = iter(jax.random.split(key, 3 + 4 * NUM_LAYERS + 2))

    def w(shape):
        return (jax.random.normal(next(keys), shape, jnp.float32) * std).astype(jnp.bfloat16)

    params = {
        "word_emb": jax.random.normal(next(keys), (VOCAB, HIDDEN), jnp.float32) * std,
        "pos_emb": jax.random.normal(next(keys), (MAX_POS, HIDDEN), jnp.float32) * std,
        "type_emb": jax.random.normal(next(keys), (TYPE_VOCAB, HIDDEN), jnp.float32) * std,
        "emb_ln_g": jnp.ones((1, HIDDEN), jnp.float32),
        "emb_ln_b": jnp.zeros((1, HIDDEN), jnp.float32),
    }
    qkv_w, ao_w, i_w, o_w = [], [], [], []
    for _ in range(NUM_LAYERS):
        qkv_w.append(w((HIDDEN, 3 * HIDDEN)))          # fused Q|K|V projection
        ao_w.append(w((HIDDEN, HIDDEN)))
        i_w.append(w((HIDDEN, INTERMEDIATE)))
        o_w.append(w((INTERMEDIATE, HIDDEN)))
    L = NUM_LAYERS
    params["layers"] = {                               # stacked over layers
        "qkv_w": jnp.stack(qkv_w), "qkv_b": jnp.zeros((L, 1, 3 * HIDDEN), jnp.float32),
        "ao_w": jnp.stack(ao_w), "ao_b": jnp.zeros((L, 1, HIDDEN), jnp.float32),
        "attn_ln_g": jnp.ones((L, 1, HIDDEN), jnp.float32),
        "attn_ln_b": jnp.zeros((L, 1, HIDDEN), jnp.float32),
        "i_w": jnp.stack(i_w), "i_b": jnp.zeros((L, 1, INTERMEDIATE), jnp.float32),
        "o_w": jnp.stack(o_w), "o_b": jnp.zeros((L, 1, HIDDEN), jnp.float32),
        "out_ln_g": jnp.ones((L, 1, HIDDEN), jnp.float32),
        "out_ln_b": jnp.zeros((L, 1, HIDDEN), jnp.float32),
    }
    params["pooler_w"] = w((HIDDEN, HIDDEN))
    params["pooler_b"] = jnp.zeros((1, HIDDEN), jnp.float32)
    params["cls_w"] = w((HIDDEN, NUM_LABELS))
    params["cls_b"] = jnp.zeros((1, NUM_LABELS), jnp.float32)
    return params


# ---------------------------- forward pass ------------------------------------
def bert_forward(params, input_ids, token_type_ids, attention_mask):
    B, S = input_ids.shape
    H = HIDDEN
    # Embedding lookups stay as plain-JAX gathers (glue).
    emb = (params["word_emb"][input_ids]
           + params["pos_emb"][jnp.arange(S)][None, :, :]
           + params["type_emb"][token_type_ids])
    x = emb.reshape(B * S, H).astype(jnp.float32)

    # Block-diagonal additive mask (HF-style -1e9) so attention for every batch
    # element runs as ONE [B*S, B*S] matmul inside the kernel (no batch loop).
    m = attention_mask.astype(jnp.float32)                       # (B, S)
    same = jnp.eye(B, dtype=jnp.float32)                         # (B, B)
    valid = same[:, None, :, None] * m[None, None, :, :]         # (B, 1, B, S)
    valid = jnp.broadcast_to(valid, (B, S, B, S)).reshape(B * S, B * S)
    mask2d = (1.0 - valid) * -1e9

    Lp = params["layers"]
    scale = 1.0 / math.sqrt(H // NUM_HEADS)
    kernel = functools.partial(_bert_kernel, num_layers=NUM_LAYERS,
                               num_heads=NUM_HEADS, batch=B, seq=S,
                               scale=scale, eps=LN_EPS)
    args = (x, mask2d, params["emb_ln_g"], params["emb_ln_b"],
            Lp["qkv_w"], Lp["qkv_b"], Lp["ao_w"], Lp["ao_b"],
            Lp["attn_ln_g"], Lp["attn_ln_b"],
            Lp["i_w"], Lp["i_b"], Lp["o_w"], Lp["o_b"],
            Lp["out_ln_g"], Lp["out_ln_b"],
            params["pooler_w"], params["pooler_b"],
            params["cls_w"], params["cls_b"])
    return pl.pallas_call(
        kernel,
        out_shape=jax.ShapeDtypeStruct((B, NUM_LABELS), jnp.float32),
        in_specs=[_vspec(*a.shape) for a in args],
        out_specs=_vspec(B, NUM_LABELS),
    )(*args)


# ------------------------------- main -----------------------------------------
if __name__ == "__main__":
    key = jax.random.PRNGKey(0)
    k_param, k_ids = jax.random.split(key)

    params = init_params(k_param)
    input_ids = jax.random.randint(k_ids, (BATCH, SEQ), 0, VOCAB, dtype=jnp.int32)
    token_type_ids = jnp.zeros((BATCH, SEQ), jnp.int32)
    attention_mask = jnp.ones((BATCH, SEQ), jnp.int32)

    logits = jax.jit(bert_forward)(params, input_ids, token_type_ids, attention_mask)
    jax.block_until_ready(logits)
    assert logits.shape == (BATCH, NUM_LABELS)
    assert bool(jnp.all(jnp.isfinite(logits)))
    print("KERNEL_OK")
</pallas_src>

<mosaic_0001>
module attributes {stable_mosaic.version = 11 : i64} {
  func.func @_bert_kernel(%arg0: memref<16x32xf32, #tpu.memory_space<vmem>>, %arg1: memref<16x16xf32, #tpu.memory_space<vmem>>, %arg2: memref<1x32xf32, #tpu.memory_space<vmem>>, %arg3: memref<1x32xf32, #tpu.memory_space<vmem>>, %arg4: memref<2x32x96xbf16, #tpu.memory_space<vmem>>, %arg5: memref<2x1x96xf32, #tpu.memory_space<vmem>>, %arg6: memref<2x32x32xbf16, #tpu.memory_space<vmem>>, %arg7: memref<2x1x32xf32, #tpu.memory_space<vmem>>, %arg8: memref<2x1x32xf32, #tpu.memory_space<vmem>>, %arg9: memref<2x1x32xf32, #tpu.memory_space<vmem>>, %arg10: memref<2x32x64xbf16, #tpu.memory_space<vmem>>, %arg11: memref<2x1x64xf32, #tpu.memory_space<vmem>>, %arg12: memref<2x64x32xbf16, #tpu.memory_space<vmem>>, %arg13: memref<2x1x32xf32, #tpu.memory_space<vmem>>, %arg14: memref<2x1x32xf32, #tpu.memory_space<vmem>>, %arg15: memref<2x1x32xf32, #tpu.memory_space<vmem>>, %arg16: memref<32x32xbf16, #tpu.memory_space<vmem>>, %arg17: memref<1x32xf32, #tpu.memory_space<vmem>>, %arg18: memref<32x2xbf16, #tpu.memory_space<vmem>>, %arg19: memref<1x2xf32, #tpu.memory_space<vmem>>, %arg20: memref<2x2xf32, #tpu.memory_space<vmem>>) attributes {dimension_semantics = [], scalar_prefetch = 0 : i64, scratch_operands = 0 : i64, tpu.core_type = #tpu.core_type<tc>} {
    %c0 = arith.constant 0 : index
    %c0_0 = arith.constant 0 : index
    %0 = vector.load %arg0[%c0, %c0_0] : memref<16x32xf32, #tpu.memory_space<vmem>>, vector<16x32xf32>
    %c0_1 = arith.constant 0 : index
    %c0_2 = arith.constant 0 : index
    %1 = vector.load %arg2[%c0_1, %c0_2] : memref<1x32xf32, #tpu.memory_space<vmem>>, vector<1x32xf32>
    %c0_3 = arith.constant 0 : index
    %c0_4 = arith.constant 0 : index
    %2 = vector.load %arg3[%c0_3, %c0_4] : memref<1x32xf32, #tpu.memory_space<vmem>>, vector<1x32xf32>
    %cst = arith.constant dense<0.000000e+00> : vector<16xf32>
    %3 = vector.multi_reduction <add>, %0, %cst [1] : vector<16x32xf32> to vector<16xf32>
    %4 = vector.shape_cast %3 : vector<16xf32> to vector<16x1xf32>
    %cst_5 = arith.constant 3.200000e+01 : f32
    %5 = vector.broadcast %cst_5 : f32 to vector<16x1xf32>
    %6 = arith.divf %4, %5 : vector<16x1xf32>
    %7 = vector.broadcast %6 : vector<16x1xf32> to vector<16x32xf32>
    %8 = arith.subf %0, %7 : vector<16x32xf32>
    %9 = arith.mulf %8, %8 : vector<16x32xf32>
    %cst_6 = arith.constant dense<0.000000e+00> : vector<16xf32>
    %10 = vector.multi_reduction <add>, %9, %cst_6 [1] : vector<16x32xf32> to vector<16xf32>
    %11 = vector.shape_cast %10 : vector<16xf32> to vector<16x1xf32>
    %cst_7 = arith.constant 3.200000e+01 : f32
    %12 = vector.broadcast %cst_7 : f32 to vector<16x1xf32>
    %13 = arith.divf %11, %12 : vector<16x1xf32>
    %14 = vector.broadcast %6 : vector<16x1xf32> to vector<16x32xf32>
    %15 = arith.subf %0, %14 : vector<16x32xf32>
    %cst_8 = arith.constant 9.99999996E-13 : f32
    %16 = vector.broadcast %cst_8 : f32 to vector<16x1xf32>
    %17 = arith.addf %13, %16 : vector<16x1xf32>
    %18 = math.rsqrt %17 : vector<16x1xf32>
    %19 = vector.broadcast %18 : vector<16x1xf32> to vector<16x32xf32>
    %20 = arith.mulf %15, %19 : vector<16x32xf32>
    %21 = vector.broadcast %1 : vector<1x32xf32> to vector<16x32xf32>
    %22 = arith.mulf %20, %21 : vector<16x32xf32>
    %23 = vector.broadcast %2 : vector<1x32xf32> to vector<16x32xf32>
    %24 = arith.addf %22, %23 : vector<16x32xf32>
    %c0_9 = arith.constant 0 : index
    %c0_10 = arith.constant 0 : index
    %25 = vector.load %arg1[%c0_9, %c0_10] : memref<16x16xf32, #tpu.memory_space<vmem>>, vector<16x16xf32>
    %26 = arith.truncf %24 : vector<16x32xf32> to vector<16x32xbf16>
    %c0_11 = arith.constant 0 : index
    %c0_12 = arith.constant 0 : index
    %c0_13 = arith.constant 0 : index
    %27 = vector.load %arg4[%c0_11, %c0_12, %c0_13] : memref<2x32x96xbf16, #tpu.memory_space<vmem>>, vector<1x32x96xbf16>
    %28 = vector.shape_cast %27 : vector<1x32x96xbf16> to vector<32x96xbf16>
    %cst_14 = arith.constant dense<0.000000e+00> : vector<16x96xf32>
    %29 = tpu.matmul %26, %28, %cst_14 {dimension_numbers = #tpu.dot_dimension_numbers<[1], [0], [0], [1], [0, 0, 1, 1], [], []>} : vector<16x32xbf16>, vector<32x96xbf16>, vector<16x96xf32> -> vector<16x96xf32>
    %c0_15 = arith.constant 0 : index
    %c0_16 = arith.constant 0 : index
    %c0_17 = arith.constant 0 : index
    %30 = vector.load %arg5[%c0_15, %c0_16, %c0_17] : memref<2x1x96xf32, #tpu.memory_space<vmem>>, vector<1x1x96xf32>
    %31 = vector.shape_cast %30 : vector<1x1x96xf32> to vector<1x96xf32>
    %32 = vector.broadcast %31 : vector<1x96xf32> to vector<16x96xf32>
    %33 = arith.addf %29, %32 : vector<16x96xf32>
    %34 = vector.extract_strided_slice %33 {offsets = [0, 0], sizes = [16, 8], strides = [1, 1]} : vector<16x96xf32> to vector<16x8xf32>
    %35 = arith.truncf %34 : vector<16x8xf32> to vector<16x8xbf16>
    %36 = vector.extract_strided_slice %33 {offsets = [0, 32], sizes = [16, 8], strides = [1, 1]} : vector<16x96xf32> to vector<16x8xf32>
    %37 = arith.truncf %36 : vector<16x8xf32> to vector<16x8xbf16>
    %38 = vector.extract_strided_slice %33 {offsets = [0, 64], sizes = [16, 8], strides = [1, 1]} : vector<16x96xf32> to vector<16x8xf32>
    %39 = arith.truncf %38 : vector<16x8xf32> to vector<16x8xbf16>
    %cst_18 = arith.constant dense<0.000000e+00> : vector<16x16xf32>
    %40 = tpu.matmul %35, %37, %cst_18 {dimension_numbers = #tpu.dot_dimension_numbers<[1], [1], [0], [0], [0, 0, 1, 0], [], []>} : vector<16x8xbf16>, vector<16x8xbf16>, vector<16x16xf32> -> vector<16x16xf32>
    %cst_19 = arith.constant 0.353553385 : f32
    %41 = vector.broadcast %cst_19 : f32 to vector<16x16xf32>
    %42 = arith.mulf %40, %41 : vector<16x16xf32>
    %43 = arith.addf %42, %25 : vector<16x16xf32>
    %cst_20 = arith.constant dense<0xFF800000> : vector<16xf32>
    %44 = vector.multi_reduction <maximumf>, %43, %cst_20 [1] : vector<16x16xf32> to vector<16xf32>
    %45 = vector.shape_cast %44 : vector<16xf32> to vector<16x1xf32>
    %46 = vector.broadcast %45 : vector<16x1xf32> to vector<16x16xf32>
    %47 = arith.subf %43, %46 : vector<16x16xf32>
    %48 = math.exp %47 : vector<16x16xf32>
    %cst_21 = arith.constant dense<0.000000e+00> : vector<16xf32>
    %49 = vector.multi_reduction <add>, %48, %cst_21 [1] : vector<16x16xf32> to vector<16xf32>
    %50 = vector.shape_cast %49 : vector<16xf32> to vector<16x1xf32>
    %51 = tpu.reciprocal %50 {approx = true} : vector<16x1xf32> -> vector<16x1xf32>
    %52 = vector.broadcast %51 : vector<16x1xf32> to vector<16x16xf32>
    %53 = arith.mulf %48, %52 : vector<16x16xf32>
    %54 = arith.truncf %53 : vector<16x16xf32> to vector<16x16xbf16>
    %cst_22 = arith.constant dense<0.000000e+00> : vector<16x8xf32>
    %55 = tpu.matmul %54, %39, %cst_22 {dimension_numbers = #tpu.dot_dimension_numbers<[1], [0], [0], [1], [0, 0, 1, 1], [], []>} : vector<16x16xbf16>, vector<16x8xbf16>, vector<16x8xf32> -> vector<16x8xf32>
    %56 = vector.extract_strided_slice %33 {offsets = [0, 8], sizes = [16, 8], strides = [1, 1]} : vector<16x96xf32> to vector<16x8xf32>
    %57 = arith.truncf %56 : vector<16x8xf32> to vector<16x8xbf16>
    %58 = vector.extract_strided_slice %33 {offsets = [0, 40], sizes = [16, 8], strides = [1, 1]} : vector<16x96xf32> to vector<16x8xf32>
    %59 = arith.truncf %58 : vector<16x8xf32> to vector<16x8xbf16>
    %60 = vector.extract_strided_slice %33 {offsets = [0, 72], sizes = [16, 8], strides = [1, 1]} : vector<16x96xf32> to vector<16x8xf32>
    %61 = arith.truncf %60 : vector<16x8xf32> to vector<16x8xbf16>
    %cst_23 = arith.constant dense<0.000000e+00> : vector<16x16xf32>
    %62 = tpu.matmul %57, %59, %cst_23 {dimension_numbers = #tpu.dot_dimension_numbers<[1], [1], [0], [0], [0, 0, 1, 0], [], []>} : vector<16x8xbf16>, vector<16x8xbf16>, vector<16x16xf32> -> vector<16x16xf32>
    %cst_24 = arith.constant 0.353553385 : f32
    %63 = vector.broadcast %cst_24 : f32 to vector<16x16xf32>
    %64 = arith.mulf %62, %63 : vector<16x16xf32>
    %65 = arith.addf %64, %25 : vector<16x16xf32>
    %cst_25 = arith.constant dense<0xFF800000> : vector<16xf32>
    %66 = vector.multi_reduction <maximumf>, %65, %cst_25 [1] : vector<16x16xf32> to vector<16xf32>
    %67 = vector.shape_cast %66 : vector<16xf32> to vector<16x1xf32>
    %68 = vector.broadcast %67 : vector<16x1xf32> to vector<16x16xf32>
    %69 = arith.subf %65, %68 : vector<16x16xf32>
    %70 = math.exp %69 : vector<16x16xf32>
    %cst_26 = arith.constant dense<0.000000e+00> : vector<16xf32>
    %71 = vector.multi_reduction <add>, %70, %cst_26 [1] : vector<16x16xf32> to vector<16xf32>
    %72 = vector.shape_cast %71 : vector<16xf32> to vector<16x1xf32>
    %73 = tpu.reciprocal %72 {approx = true} : vector<16x1xf32> -> vector<16x1xf32>
    %74 = vector.broadcast %73 : vector<16x1xf32> to vector<16x16xf32>
    %75 = arith.mulf %70, %74 : vector<16x16xf32>
    %76 = arith.truncf %75 : vector<16x16xf32> to vector<16x16xbf16>
    %cst_27 = arith.constant dense<0.000000e+00> : vector<16x8xf32>
    %77 = tpu.matmul %76, %61, %cst_27 {dimension_numbers = #tpu.dot_dimension_numbers<[1], [0], [0], [1], [0, 0, 1, 1], [], []>} : vector<16x16xbf16>, vector<16x8xbf16>, vector<16x8xf32> -> vector<16x8xf32>
    %78 = vector.extract_strided_slice %33 {offsets = [0, 16], sizes = [16, 8], strides = [1, 1]} : vector<16x96xf32> to vector<16x8xf32>
    %79 = arith.truncf %78 : vector<16x8xf32> to vector<16x8xbf16>
    %80 = vector.extract_strided_slice %33 {offsets = [0, 48], sizes = [16, 8], strides = [1, 1]} : vector<16x96xf32> to vector<16x8xf32>
    %81 = arith.truncf %80 : vector<16x8xf32> to vector<16x8xbf16>
    %82 = vector.extract_strided_slice %33 {offsets = [0, 80], sizes = [16, 8], strides = [1, 1]} : vector<16x96xf32> to vector<16x8xf32>
    %83 = arith.truncf %82 : vector<16x8xf32> to vector<16x8xbf16>
    %cst_28 = arith.constant dense<0.000000e+00> : vector<16x16xf32>
    %84 = tpu.matmul %79, %81, %cst_28 {dimension_numbers = #tpu.dot_dimension_numbers<[1], [1], [0], [0], [0, 0, 1, 0], [], []>} : vector<16x8xbf16>, vector<16x8xbf16>, vector<16x16xf32> -> vector<16x16xf32>
    %cst_29 = arith.constant 0.353553385 : f32
    %85 = vector.broadcast %cst_29 : f32 to vector<16x16xf32>
    %86 = arith.mulf %84, %85 : vector<16x16xf32>
    %87 = arith.addf %86, %25 : vector<16x16xf32>
    %cst_30 = arith.constant dense<0xFF800000> : vector<16xf32>
    %88 = vector.multi_reduction <maximumf>, %87, %cst_30 [1] : vector<16x16xf32> to vector<16xf32>
    %89 = vector.shape_cast %88 : vector<16xf32> to vector<16x1xf32>
    %90 = vector.broadcast %89 : vector<16x1xf32> to vector<16x16xf32>
    %91 = arith.subf %87, %90 : vector<16x16xf32>
    %92 = math.exp %91 : vector<16x16xf32>
    %cst_31 = arith.constant dense<0.000000e+00> : vector<16xf32>
    %93 = vector.multi_reduction <add>, %92, %cst_31 [1] : vector<16x16xf32> to vector<16xf32>
    %94 = vector.shape_cast %93 : vector<16xf32> to vector<16x1xf32>
    %95 = tpu.reciprocal %94 {approx = true} : vector<16x1xf32> -> vector<16x1xf32>
    %96 = vector.broadcast %95 : vector<16x1xf32> to vector<16x16xf32>
    %97 = arith.mulf %92, %96 : vector<16x16xf32>
    %98 = arith.truncf %97 : vector<16x16xf32> to vector<16x16xbf16>
    %cst_32 = arith.constant dense<0.000000e+00> : vector<16x8xf32>
    %99 = tpu.matmul %98, %83, %cst_32 {dimension_numbers = #tpu.dot_dimension_numbers<[1], [0], [0], [1], [0, 0, 1, 1], [], []>} : vector<16x16xbf16>, vector<16x8xbf16>, vector<16x8xf32> -> vector<16x8xf32>
    %100 = vector.extract_strided_slice %33 {offsets = [0, 24], sizes = [16, 8], strides = [1, 1]} : vector<16x96xf32> to vector<16x8xf32>
    %101 = arith.truncf %100 : vector<16x8xf32> to vector<16x8xbf16>
    %102 = vector.extract_strided_slice %33 {offsets = [0, 56], sizes = [16, 8], strides = [1, 1]} : vector<16x96xf32> to vector<16x8xf32>
    %103 = arith.truncf %102 : vector<16x8xf32> to vector<16x8xbf16>
    %104 = vector.extract_strided_slice %33 {offsets = [0, 88], sizes = [16, 8], strides = [1, 1]} : vector<16x96xf32> to vector<16x8xf32>
    %105 = arith.truncf %104 : vector<16x8xf32> to vector<16x8xbf16>
    %cst_33 = arith.constant dense<0.000000e+00> : vector<16x16xf32>
    %106 = tpu.matmul %101, %103, %cst_33 {dimension_numbers = #tpu.dot_dimension_numbers<[1], [1], [0], [0], [0, 0, 1, 0], [], []>} : vector<16x8xbf16>, vector<16x8xbf16>, vector<16x16xf32> -> vector<16x16xf32>
    %cst_34 = arith.constant 0.353553385 : f32
    %107 = vector.broadcast %cst_34 : f32 to vector<16x16xf32>
    %108 = arith.mulf %106, %107 : vector<16x16xf32>
    %109 = arith.addf %108, %25 : vector<16x16xf32>
    %cst_35 = arith.constant dense<0xFF800000> : vector<16xf32>
    %110 = vector.multi_reduction <maximumf>, %109, %cst_35 [1] : vector<16x16xf32> to vector<16xf32>
    %111 = vector.shape_cast %110 : vector<16xf32> to vector<16x1xf32>
    %112 = vector.broadcast %111 : vector<16x1xf32> to vector<16x16xf32>
    %113 = arith.subf %109, %112 : vector<16x16xf32>
    %114 = math.exp %113 : vector<16x16xf32>
    %cst_36 = arith.constant dense<0.000000e+00> : vector<16xf32>
    %115 = vector.multi_reduction <add>, %114, %cst_36 [1] : vector<16x16xf32> to vector<16xf32>
    %116 = vector.shape_cast %115 : vector<16xf32> to vector<16x1xf32>
    %117 = tpu.reciprocal %116 {approx = true} : vector<16x1xf32> -> vector<16x1xf32>
    %118 = vector.broadcast %117 : vector<16x1xf32> to vector<16x16xf32>
    %119 = arith.mulf %114, %118 : vector<16x16xf32>
    %120 = arith.truncf %119 : vector<16x16xf32> to vector<16x16xbf16>
    %cst_37 = arith.constant dense<0.000000e+00> : vector<16x8xf32>
    %121 = tpu.matmul %120, %105, %cst_37 {dimension_numbers = #tpu.dot_dimension_numbers<[1], [0], [0], [1], [0, 0, 1, 1], [], []>} : vector<16x16xbf16>, vector<16x8xbf16>, vector<16x8xf32> -> vector<16x8xf32>
    %122 = tpu.concatenate %55, %77, %99, %121 in 1 : vector<16x8xf32>, vector<16x8xf32>, vector<16x8xf32>, vector<16x8xf32> -> vector<16x32xf32>
    %123 = arith.truncf %122 : vector<16x32xf32> to vector<16x32xbf16>
    %c0_38 = arith.constant 0 : index
    %c0_39 = arith.constant 0 : index
    %c0_40 = arith.constant 0 : index
    %124 = vector.load %arg6[%c0_38, %c0_39, %c0_40] : memref<2x32x32xbf16, #tpu.memory_space<vmem>>, vector<1x32x32xbf16>
    %125 = vector.shape_cast %124 : vector<1x32x32xbf16> to vector<32x32xbf16>
    %cst_41 = arith.constant dense<0.000000e+00> : vector<16x32xf32>
    %126 = tpu.matmul %123, %125, %cst_41 {dimension_numbers = #tpu.dot_dimension_numbers<[1], [0], [0], [1], [0, 0, 1, 1], [], []>} : vector<16x32xbf16>, vector<32x32xbf16>, vector<16x32xf32> -> vector<16x32xf32>
    %c0_42 = arith.constant 0 : index
    %c0_43 = arith.constant 0 : index
    %c0_44 = arith.constant 0 : index
    %127 = vector.load %arg7[%c0_42, %c0_43, %c0_44] : memref<2x1x32xf32, #tpu.memory_space<vmem>>, vector<1x1x32xf32>
    %128 = vector.shape_cast %127 : vector<1x1x32xf32> to vector<1x32xf32>
    %129 = vector.broadcast %128 : vector<1x32xf32> to vector<16x32xf32>
    %130 = arith.addf %126, %129 : vector<16x32xf32>
    %131 = arith.addf %130, %24 : vector<16x32xf32>
    %c0_45 = arith.constant 0 : index
    %c0_46 = arith.constant 0 : index
    %c0_47 = arith.constant 0 : index
    %132 = vector.load %arg8[%c0_45, %c0_46, %c0_47] : memref<2x1x32xf32, #tpu.memory_space<vmem>>, vector<1x1x32xf32>
    %133 = vector.shape_cast %132 : vector<1x1x32xf32> to vector<1x32xf32>
    %c0_48 = arith.constant 0 : index
    %c0_49 = arith.constant 0 : index
    %c0_50 = arith.constant 0 : index
    %134 = vector.load %arg9[%c0_48, %c0_49, %c0_50] : memref<2x1x32xf32, #tpu.memory_space<vmem>>, vector<1x1x32xf32>
    %135 = vector.shape_cast %134 : vector<1x1x32xf32> to vector<1x32xf32>
    %cst_51 = arith.constant dense<0.000000e+00> : vector<16xf32>
    %136 = vector.multi_reduction <add>, %131, %cst_51 [1] : vector<16x32xf32> to vector<16xf32>
    %137 = vector.shape_cast %136 : vector<16xf32> to vector<16x1xf32>
    %cst_52 = arith.constant 3.200000e+01 : f32
    %138 = vector.broadcast %cst_52 : f32 to vector<16x1xf32>
    %139 = arith.divf %137, %138 : vector<16x1xf32>
    %140 = vector.broadcast %139 : vector<16x1xf32> to vector<16x32xf32>
    %141 = arith.subf %131, %140 : vector<16x32xf32>
    %142 = arith.mulf %141, %141 : vector<16x32xf32>
    %cst_53 = arith.constant dense<0.000000e+00> : vector<16xf32>
    %143 = vector.multi_reduction <add>, %142, %cst_53 [1] : vector<16x32xf32> to vector<16xf32>
    %144 = vector.shape_cast %143 : vector<16xf32> to vector<16x1xf32>
    %cst_54 = arith.constant 3.200000e+01 : f32
    %145 = vector.broadcast %cst_54 : f32 to vector<16x1xf32>
    %146 = arith.divf %144, %145 : vector<16x1xf32>
    %147 = vector.broadcast %139 : vector<16x1xf32> to vector<16x32xf32>
    %148 = arith.subf %131, %147 : vector<16x32xf32>
    %cst_55 = arith.constant 9.99999996E-13 : f32
    %149 = vector.broadcast %cst_55 : f32 to vector<16x1xf32>
    %150 = arith.addf %146, %149 : vector<16x1xf32>
    %151 = math.rsqrt %150 : vector<16x1xf32>
    %152 = vector.broadcast %151 : vector<16x1xf32> to vector<16x32xf32>
    %153 = arith.mulf %148, %152 : vector<16x32xf32>
    %154 = vector.broadcast %133 : vector<1x32xf32> to vector<16x32xf32>
    %155 = arith.mulf %153, %154 : vector<16x32xf32>
    %156 = vector.broadcast %135 : vector<1x32xf32> to vector<16x32xf32>
    %157 = arith.addf %155, %156 : vector<16x32xf32>
    %158 = arith.truncf %157 : vector<16x32xf32> to vector<16x32xbf16>
    %c0_56 = arith.constant 0 : index
    %c0_57 = arith.constant 0 : index
    %c0_58 = arith.constant 0 : index
    %159 = vector.load %arg10[%c0_56, %c0_57, %c0_58] : memref<2x32x64xbf16, #tpu.memory_space<vmem>>, vector<1x32x64xbf16>
    %160 = vector.shape_cast %159 : vector<1x32x64xbf16> to vector<32x64xbf16>
    %cst_59 = arith.constant dense<0.000000e+00> : vector<16x64xf32>
    %161 = tpu.matmul %158, %160, %cst_59 {dimension_numbers = #tpu.dot_dimension_numbers<[1], [0], [0], [1], [0, 0, 1, 1], [], []>} : vector<16x32xbf16>, vector<32x64xbf16>, vector<16x64xf32> -> vector<16x64xf32>
    %c0_60 = arith.constant 0 : index
    %c0_61 = arith.constant 0 : index
    %c0_62 = arith.constant 0 : index
    %162 = vector.load %arg11[%c0_60, %c0_61, %c0_62] : memref<2x1x64xf32, #tpu.memory_space<vmem>>, vector<1x1x64xf32>
    %163 = vector.shape_cast %162 : vector<1x1x64xf32> to vector<1x64xf32>
    %164 = vector.broadcast %163 : vector<1x64xf32> to vector<16x64xf32>
    %165 = arith.addf %161, %164 : vector<16x64xf32>
    %166 = arith.mulf %165, %165 : vector<16x64xf32>
    %167 = arith.mulf %165, %166 : vector<16x64xf32>
    %cst_63 = arith.constant 4.471500e-02 : f32
    %168 = vector.broadcast %cst_63 : f32 to vector<16x64xf32>
    %169 = arith.mulf %168, %167 : vector<16x64xf32>
    %170 = arith.addf %165, %169 : vector<16x64xf32>
    %cst_64 = arith.constant 0.797884583 : f32
    %171 = vector.broadcast %cst_64 : f32 to vector<16x64xf32>
    %172 = arith.mulf %171, %170 : vector<16x64xf32>
    %173 = math.tanh %172 : vector<16x64xf32>
    %cst_65 = arith.constant 1.000000e+00 : f32
    %174 = vector.broadcast %cst_65 : f32 to vector<16x64xf32>
    %175 = arith.addf %174, %173 : vector<16x64xf32>
    %cst_66 = arith.constant 5.000000e-01 : f32
    %176 = vector.broadcast %cst_66 : f32 to vector<16x64xf32>
    %177 = arith.mulf %176, %175 : vector<16x64xf32>
    %178 = arith.mulf %165, %177 : vector<16x64xf32>
    %179 = arith.truncf %178 : vector<16x64xf32> to vector<16x64xbf16>
    %c0_67 = arith.constant 0 : index
    %c0_68 = arith.constant 0 : index
    %c0_69 = arith.constant 0 : index
    %180 = vector.load %arg12[%c0_67, %c0_68, %c0_69] : memref<2x64x32xbf16, #tpu.memory_space<vmem>>, vector<1x64x32xbf16>
    %181 = vector.shape_cast %180 : vector<1x64x32xbf16> to vector<64x32xbf16>
    %cst_70 = arith.constant dense<0.000000e+00> : vector<16x32xf32>
    %182 = tpu.matmul %179, %181, %cst_70 {dimension_numbers = #tpu.dot_dimension_numbers<[1], [0], [0], [1], [0, 0, 1, 1], [], []>} : vector<16x64xbf16>, vector<64x32xbf16>, vector<16x32xf32> -> vector<16x32xf32>
    %c0_71 = arith.constant 0 : index
    %c0_72 = arith.constant 0 : index
    %c0_73 = arith.constant 0 : index
    %183 = vector.load %arg13[%c0_71, %c0_72, %c0_73] : memref<2x1x32xf32, #tpu.memory_space<vmem>>, vector<1x1x32xf32>
    %184 = vector.shape_cast %183 : vector<1x1x32xf32> to vector<1x32xf32>
    %185 = vector.broadcast %184 : vector<1x32xf32> to vector<16x32xf32>
    %186 = arith.addf %182, %185 : vector<16x32xf32>
    %187 = arith.addf %186, %157 : vector<16x32xf32>
    %c0_74 = arith.constant 0 : index
    %c0_75 = arith.constant 0 : index
    %c0_76 = arith.constant 0 : index
    %188 = vector.load %arg14[%c0_74, %c0_75, %c0_76] : memref<2x1x32xf32, #tpu.memory_space<vmem>>, vector<1x1x32xf32>
    %189 = vector.shape_cast %188 : vector<1x1x32xf32> to vector<1x32xf32>
    %c0_77 = arith.constant 0 : index
    %c0_78 = arith.constant 0 : index
    %c0_79 = arith.constant 0 : index
    %190 = vector.load %arg15[%c0_77, %c0_78, %c0_79] : memref<2x1x32xf32, #tpu.memory_space<vmem>>, vector<1x1x32xf32>
    %191 = vector.shape_cast %190 : vector<1x1x32xf32> to vector<1x32xf32>
    %cst_80 = arith.constant dense<0.000000e+00> : vector<16xf32>
    %192 = vector.multi_reduction <add>, %187, %cst_80 [1] : vector<16x32xf32> to vector<16xf32>
    %193 = vector.shape_cast %192 : vector<16xf32> to vector<16x1xf32>
    %cst_81 = arith.constant 3.200000e+01 : f32
    %194 = vector.broadcast %cst_81 : f32 to vector<16x1xf32>
    %195 = arith.divf %193, %194 : vector<16x1xf32>
    %196 = vector.broadcast %195 : vector<16x1xf32> to vector<16x32xf32>
    %197 = arith.subf %187, %196 : vector<16x32xf32>
    %198 = arith.mulf %197, %197 : vector<16x32xf32>
    %cst_82 = arith.constant dense<0.000000e+00> : vector<16xf32>
    %199 = vector.multi_reduction <add>, %198, %cst_82 [1] : vector<16x32xf32> to vector<16xf32>
    %200 = vector.shape_cast %199 : vector<16xf32> to vector<16x1xf32>
    %cst_83 = arith.constant 3.200000e+01 : f32
    %201 = vector.broadcast %cst_83 : f32 to vector<16x1xf32>
    %202 = arith.divf %200, %201 : vector<16x1xf32>
    %203 = vector.broadcast %195 : vector<16x1xf32> to vector<16x32xf32>
    %204 = arith.subf %187, %203 : vector<16x32xf32>
    %cst_84 = arith.constant 9.99999996E-13 : f32
    %205 = vector.broadcast %cst_84 : f32 to vector<16x1xf32>
    %206 = arith.addf %202, %205 : vector<16x1xf32>
    %207 = math.rsqrt %206 : vector<16x1xf32>
    %208 = vector.broadcast %207 : vector<16x1xf32> to vector<16x32xf32>
    %209 = arith.mulf %204, %208 : vector<16x32xf32>
    %210 = vector.broadcast %189 : vector<1x32xf32> to vector<16x32xf32>
    %211 = arith.mulf %209, %210 : vector<16x32xf32>
    %212 = vector.broadcast %191 : vector<1x32xf32> to vector<16x32xf32>
    %213 = arith.addf %211, %212 : vector<16x32xf32>
    %214 = arith.truncf %213 : vector<16x32xf32> to vector<16x32xbf16>
    %c1 = arith.constant 1 : index
    %c0_85 = arith.constant 0 : index
    %c0_86 = arith.constant 0 : index
    %215 = vector.load %arg4[%c1, %c0_85, %c0_86] : memref<2x32x96xbf16, #tpu.memory_space<vmem>>, vector<1x32x96xbf16>
    %216 = vector.shape_cast %215 : vector<1x32x96xbf16> to vector<32x96xbf16>
    %cst_87 = arith.constant dense<0.000000e+00> : vector<16x96xf32>
    %217 = tpu.matmul %214, %216, %cst_87 {dimension_numbers = #tpu.dot_dimension_numbers<[1], [0], [0], [1], [0, 0, 1, 1], [], []>} : vector<16x32xbf16>, vector<32x96xbf16>, vector<16x96xf32> -> vector<16x96xf32>
    %c1_88 = arith.constant 1 : index
    %c0_89 = arith.constant 0 : index
    %c0_90 = arith.constant 0 : index
    %218 = vector.load %arg5[%c1_88, %c0_89, %c0_90] : memref<2x1x96xf32, #tpu.memory_space<vmem>>, vector<1x1x96xf32>
    %219 = vector.shape_cast %218 : vector<1x1x96xf32> to vector<1x96xf32>
    %220 = vector.broadcast %219 : vector<1x96xf32> to vector<16x96xf32>
    %221 = arith.addf %217, %220 : vector<16x96xf32>
    %222 = vector.extract_strided_slice %221 {offsets = [0, 0], sizes = [16, 8], strides = [1, 1]} : vector<16x96xf32> to vector<16x8xf32>
    %223 = arith.truncf %222 : vector<16x8xf32> to vector<16x8xbf16>
    %224 = vector.extract_strided_slice %221 {offsets = [0, 32], sizes = [16, 8], strides = [1, 1]} : vector<16x96xf32> to vector<16x8xf32>
    %225 = arith.truncf %224 : vector<16x8xf32> to vector<16x8xbf16>
    %226 = vector.extract_strided_slice %221 {offsets = [0, 64], sizes = [16, 8], strides = [1, 1]} : vector<16x96xf32> to vector<16x8xf32>
    %227 = arith.truncf %226 : vector<16x8xf32> to vector<16x8xbf16>
    %cst_91 = arith.constant dense<0.000000e+00> : vector<16x16xf32>
    %228 = tpu.matmul %223, %225, %cst_91 {dimension_numbers = #tpu.dot_dimension_numbers<[1], [1], [0], [0], [0, 0, 1, 0], [], []>} : vector<16x8xbf16>, vector<16x8xbf16>, vector<16x16xf32> -> vector<16x16xf32>
    %cst_92 = arith.constant 0.353553385 : f32
    %229 = vector.broadcast %cst_92 : f32 to vector<16x16xf32>
    %230 = arith.mulf %228, %229 : vector<16x16xf32>
    %231 = arith.addf %230, %25 : vector<16x16xf32>
    %cst_93 = arith.constant dense<0xFF800000> : vector<16xf32>
    %232 = vector.multi_reduction <maximumf>, %231, %cst_93 [1] : vector<16x16xf32> to vector<16xf32>
    %233 = vector.shape_cast %232 : vector<16xf32> to vector<16x1xf32>
    %234 = vector.broadcast %233 : vector<16x1xf32> to vector<16x16xf32>
    %235 = arith.subf %231, %234 : vector<16x16xf32>
    %236 = math.exp %235 : vector<16x16xf32>
    %cst_94 = arith.constant dense<0.000000e+00> : vector<16xf32>
    %237 = vector.multi_reduction <add>, %236, %cst_94 [1] : vector<16x16xf32> to vector<16xf32>
    %238 = vector.shape_cast %237 : vector<16xf32> to vector<16x1xf32>
    %239 = tpu.reciprocal %238 {approx = true} : vector<16x1xf32> -> vector<16x1xf32>
    %240 = vector.broadcast %239 : vector<16x1xf32> to vector<16x16xf32>
    %241 = arith.mulf %236, %240 : vector<16x16xf32>
    %242 = arith.truncf %241 : vector<16x16xf32> to vector<16x16xbf16>
    %cst_95 = arith.constant dense<0.000000e+00> : vector<16x8xf32>
    %243 = tpu.matmul %242, %227, %cst_95 {dimension_numbers = #tpu.dot_dimension_numbers<[1], [0], [0], [1], [0, 0, 1, 1], [], []>} : vector<16x16xbf16>, vector<16x8xbf16>, vector<16x8xf32> -> vector<16x8xf32>
    %244 = vector.extract_strided_slice %221 {offsets = [0, 8], sizes = [16, 8], strides = [1, 1]} : vector<16x96xf32> to vector<16x8xf32>
    %245 = arith.truncf %244 : vector<16x8xf32> to vector<16x8xbf16>
    %246 = vector.extract_strided_slice %221 {offsets = [0, 40], sizes = [16, 8], strides = [1, 1]} : vector<16x96xf32> to vector<16x8xf32>
    %247 = arith.truncf %246 : vector<16x8xf32> to vector<16x8xbf16>
    %248 = vector.extract_strided_slice %221 {offsets = [0, 72], sizes = [16, 8], strides = [1, 1]} : vector<16x96xf32> to vector<16x8xf32>
    %249 = arith.truncf %248 : vector<16x8xf32> to vector<16x8xbf16>
    %cst_96 = arith.constant dense<0.000000e+00> : vector<16x16xf32>
    %250 = tpu.matmul %245, %247, %cst_96 {dimension_numbers = #tpu.dot_dimension_numbers<[1], [1], [0], [0], [0, 0, 1, 0], [], []>} : vector<16x8xbf16>, vector<16x8xbf16>, vector<16x16xf32> -> vector<16x16xf32>
    %cst_97 = arith.constant 0.353553385 : f32
    %251 = vector.broadcast %cst_97 : f32 to vector<16x16xf32>
    %252 = arith.mulf %250, %251 : vector<16x16xf32>
    %253 = arith.addf %252, %25 : vector<16x16xf32>
    %cst_98 = arith.constant dense<0xFF800000> : vector<16xf32>
    %254 = vector.multi_reduction <maximumf>, %253, %cst_98 [1] : vector<16x16xf32> to vector<16xf32>
    %255 = vector.shape_cast %254 : vector<16xf32> to vector<16x1xf32>
    %256 = vector.broadcast %255 : vector<16x1xf32> to vector<16x16xf32>
    %257 = arith.subf %253, %256 : vector<16x16xf32>
    %258 = math.exp %257 : vector<16x16xf32>
    %cst_99 = arith.constant dense<0.000000e+00> : vector<16xf32>
    %259 = vector.multi_reduction <add>, %258, %cst_99 [1] : vector<16x16xf32> to vector<16xf32>
    %260 = vector.shape_cast %259 : vector<16xf32> to vector<16x1xf32>
    %261 = tpu.reciprocal %260 {approx = true} : vector<16x1xf32> -> vector<16x1xf32>
    %262 = vector.broadcast %261 : vector<16x1xf32> to vector<16x16xf32>
    %263 = arith.mulf %258, %262 : vector<16x16xf32>
    %264 = arith.truncf %263 : vector<16x16xf32> to vector<16x16xbf16>
    %cst_100 = arith.constant dense<0.000000e+00> : vector<16x8xf32>
    %265 = tpu.matmul %264, %249, %cst_100 {dimension_numbers = #tpu.dot_dimension_numbers<[1], [0], [0], [1], [0, 0, 1, 1], [], []>} : vector<16x16xbf16>, vector<16x8xbf16>, vector<16x8xf32> -> vector<16x8xf32>
    %266 = vector.extract_strided_slice %221 {offsets = [0, 16], sizes = [16, 8], strides = [1, 1]} : vector<16x96xf32> to vector<16x8xf32>
    %267 = arith.truncf %266 : vector<16x8xf32> to vector<16x8xbf16>
    %268 = vector.extract_strided_slice %221 {offsets = [0, 48], sizes = [16, 8], strides = [1, 1]} : vector<16x96xf32> to vector<16x8xf32>
    %269 = arith.truncf %268 : vector<16x8xf32> to vector<16x8xbf16>
    %270 = vector.extract_strided_slice %221 {offsets = [0, 80], sizes = [16, 8], strides = [1, 1]} : vector<16x96xf32> to vector<16x8xf32>
    %271 = arith.truncf %270 : vector<16x8xf32> to vector<16x8xbf16>
    %cst_101 = arith.constant dense<0.000000e+00> : vector<16x16xf32>
    %272 = tpu.matmul %267, %269, %cst_101 {dimension_numbers = #tpu.dot_dimension_numbers<[1], [1], [0], [0], [0, 0, 1, 0], [], []>} : vector<16x8xbf16>, vector<16x8xbf16>, vector<16x16xf32> -> vector<16x16xf32>
    %cst_102 = arith.constant 0.353553385 : f32
    %273 = vector.broadcast %cst_102 : f32 to vector<16x16xf32>
    %274 = arith.mulf %272, %273 : vector<16x16xf32>
    %275 = arith.addf %274, %25 : vector<16x16xf32>
    %cst_103 = arith.constant dense<0xFF800000> : vector<16xf32>
    %276 = vector.multi_reduction <maximumf>, %275, %cst_103 [1] : vector<16x16xf32> to vector<16xf32>
    %277 = vector.shape_cast %276 : vector<16xf32> to vector<16x1xf32>
    %278 = vector.broadcast %277 : vector<16x1xf32> to vector<16x16xf32>
    %279 = arith.subf %275, %278 : vector<16x16xf32>
    %280 = math.exp %279 : vector<16x16xf32>
    %cst_104 = arith.constant dense<0.000000e+00> : vector<16xf32>
    %281 = vector.multi_reduction <add>, %280, %cst_104 [1] : vector<16x16xf32> to vector<16xf32>
    %282 = vector.shape_cast %281 : vector<16xf32> to vector<16x1xf32>
    %283 = tpu.reciprocal %282 {approx = true} : vector<16x1xf32> -> vector<16x1xf32>
    %284 = vector.broadcast %283 : vector<16x1xf32> to vector<16x16xf32>
    %285 = arith.mulf %280, %284 : vector<16x16xf32>
    %286 = arith.truncf %285 : vector<16x16xf32> to vector<16x16xbf16>
    %cst_105 = arith.constant dense<0.000000e+00> : vector<16x8xf32>
    %287 = tpu.matmul %286, %271, %cst_105 {dimension_numbers = #tpu.dot_dimension_numbers<[1], [0], [0], [1], [0, 0, 1, 1], [], []>} : vector<16x16xbf16>, vector<16x8xbf16>, vector<16x8xf32> -> vector<16x8xf32>
    %288 = vector.extract_strided_slice %221 {offsets = [0, 24], sizes = [16, 8], strides = [1, 1]} : vector<16x96xf32> to vector<16x8xf32>
    %289 = arith.truncf %288 : vector<16x8xf32> to vector<16x8xbf16>
    %290 = vector.extract_strided_slice %221 {offsets = [0, 56], sizes = [16, 8], strides = [1, 1]} : vector<16x96xf32> to vector<16x8xf32>
    %291 = arith.truncf %290 : vector<16x8xf32> to vector<16x8xbf16>
    %292 = vector.extract_strided_slice %221 {offsets = [0, 88], sizes = [16, 8], strides = [1, 1]} : vector<16x96xf32> to vector<16x8xf32>
    %293 = arith.truncf %292 : vector<16x8xf32> to vector<16x8xbf16>
    %cst_106 = arith.constant dense<0.000000e+00> : vector<16x16xf32>
    %294 = tpu.matmul %289, %291, %cst_106 {dimension_numbers = #tpu.dot_dimension_numbers<[1], [1], [0], [0], [0, 0, 1, 0], [], []>} : vector<16x8xbf16>, vector<16x8xbf16>, vector<16x16xf32> -> vector<16x16xf32>
    %cst_107 = arith.constant 0.353553385 : f32
    %295 = vector.broadcast %cst_107 : f32 to vector<16x16xf32>
    %296 = arith.mulf %294, %295 : vector<16x16xf32>
    %297 = arith.addf %296, %25 : vector<16x16xf32>
    %cst_108 = arith.constant dense<0xFF800000> : vector<16xf32>
    %298 = vector.multi_reduction <maximumf>, %297, %cst_108 [1] : vector<16x16xf32> to vector<16xf32>
    %299 = vector.shape_cast %298 : vector<16xf32> to vector<16x1xf32>
    %300 = vector.broadcast %299 : vector<16x1xf32> to vector<16x16xf32>
    %301 = arith.subf %297, %300 : vector<16x16xf32>
    %302 = math.exp %301 : vector<16x16xf32>
    %cst_109 = arith.constant dense<0.000000e+00> : vector<16xf32>
    %303 = vector.multi_reduction <add>, %302, %cst_109 [1] : vector<16x16xf32> to vector<16xf32>
    %304 = vector.shape_cast %303 : vector<16xf32> to vector<16x1xf32>
    %305 = tpu.reciprocal %304 {approx = true} : vector<16x1xf32> -> vector<16x1xf32>
    %306 = vector.broadcast %305 : vector<16x1xf32> to vector<16x16xf32>
    %307 = arith.mulf %302, %306 : vector<16x16xf32>
    %308 = arith.truncf %307 : vector<16x16xf32> to vector<16x16xbf16>
    %cst_110 = arith.constant dense<0.000000e+00> : vector<16x8xf32>
    %309 = tpu.matmul %308, %293, %cst_110 {dimension_numbers = #tpu.dot_dimension_numbers<[1], [0], [0], [1], [0, 0, 1, 1], [], []>} : vector<16x16xbf16>, vector<16x8xbf16>, vector<16x8xf32> -> vector<16x8xf32>
    %310 = tpu.concatenate %243, %265, %287, %309 in 1 : vector<16x8xf32>, vector<16x8xf32>, vector<16x8xf32>, vector<16x8xf32> -> vector<16x32xf32>
    %311 = arith.truncf %310 : vector<16x32xf32> to vector<16x32xbf16>
    %c1_111 = arith.constant 1 : index
    %c0_112 = arith.constant 0 : index
    %c0_113 = arith.constant 0 : index
    %312 = vector.load %arg6[%c1_111, %c0_112, %c0_113] : memref<2x32x32xbf16, #tpu.memory_space<vmem>>, vector<1x32x32xbf16>
    %313 = vector.shape_cast %312 : vector<1x32x32xbf16> to vector<32x32xbf16>
    %cst_114 = arith.constant dense<0.000000e+00> : vector<16x32xf32>
    %314 = tpu.matmul %311, %313, %cst_114 {dimension_numbers = #tpu.dot_dimension_numbers<[1], [0], [0], [1], [0, 0, 1, 1], [], []>} : vector<16x32xbf16>, vector<32x32xbf16>, vector<16x32xf32> -> vector<16x32xf32>
    %c1_115 = arith.constant 1 : index
    %c0_116 = arith.constant 0 : index
    %c0_117 = arith.constant 0 : index
    %315 = vector.load %arg7[%c1_115, %c0_116, %c0_117] : memref<2x1x32xf32, #tpu.memory_space<vmem>>, vector<1x1x32xf32>
    %316 = vector.shape_cast %315 : vector<1x1x32xf32> to vector<1x32xf32>
    %317 = vector.broadcast %316 : vector<1x32xf32> to vector<16x32xf32>
    %318 = arith.addf %314, %317 : vector<16x32xf32>
    %319 = arith.addf %318, %213 : vector<16x32xf32>
    %c1_118 = arith.constant 1 : index
    %c0_119 = arith.constant 0 : index
    %c0_120 = arith.constant 0 : index
    %320 = vector.load %arg8[%c1_118, %c0_119, %c0_120] : memref<2x1x32xf32, #tpu.memory_space<vmem>>, vector<1x1x32xf32>
    %321 = vector.shape_cast %320 : vector<1x1x32xf32> to vector<1x32xf32>
    %c1_121 = arith.constant 1 : index
    %c0_122 = arith.constant 0 : index
    %c0_123 = arith.constant 0 : index
    %322 = vector.load %arg9[%c1_121, %c0_122, %c0_123] : memref<2x1x32xf32, #tpu.memory_space<vmem>>, vector<1x1x32xf32>
    %323 = vector.shape_cast %322 : vector<1x1x32xf32> to vector<1x32xf32>
    %cst_124 = arith.constant dense<0.000000e+00> : vector<16xf32>
    %324 = vector.multi_reduction <add>, %319, %cst_124 [1] : vector<16x32xf32> to vector<16xf32>
    %325 = vector.shape_cast %324 : vector<16xf32> to vector<16x1xf32>
    %cst_125 = arith.constant 3.200000e+01 : f32
    %326 = vector.broadcast %cst_125 : f32 to vector<16x1xf32>
    %327 = arith.divf %325, %326 : vector<16x1xf32>
    %328 = vector.broadcast %327 : vector<16x1xf32> to vector<16x32xf32>
    %329 = arith.subf %319, %328 : vector<16x32xf32>
    %330 = arith.mulf %329, %329 : vector<16x32xf32>
    %cst_126 = arith.constant dense<0.000000e+00> : vector<16xf32>
    %331 = vector.multi_reduction <add>, %330, %cst_126 [1] : vector<16x32xf32> to vector<16xf32>
    %332 = vector.shape_cast %331 : vector<16xf32> to vector<16x1xf32>
    %cst_127 = arith.constant 3.200000e+01 : f32
    %333 = vector.broadcast %cst_127 : f32 to vector<16x1xf32>
    %334 = arith.divf %332, %333 : vector<16x1xf32>
    %335 = vector.broadcast %327 : vector<16x1xf32> to vector<16x32xf32>
    %336 = arith.subf %319, %335 : vector<16x32xf32>
    %cst_128 = arith.constant 9.99999996E-13 : f32
    %337 = vector.broadcast %cst_128 : f32 to vector<16x1xf32>
    %338 = arith.addf %334, %337 : vector<16x1xf32>
    %339 = math.rsqrt %338 : vector<16x1xf32>
    %340 = vector.broadcast %339 : vector<16x1xf32> to vector<16x32xf32>
    %341 = arith.mulf %336, %340 : vector<16x32xf32>
    %342 = vector.broadcast %321 : vector<1x32xf32> to vector<16x32xf32>
    %343 = arith.mulf %341, %342 : vector<16x32xf32>
    %344 = vector.broadcast %323 : vector<1x32xf32> to vector<16x32xf32>
    %345 = arith.addf %343, %344 : vector<16x32xf32>
    %346 = arith.truncf %345 : vector<16x32xf32> to vector<16x32xbf16>
    %c1_129 = arith.constant 1 : index
    %c0_130 = arith.constant 0 : index
    %c0_131 = arith.constant 0 : index
    %347 = vector.load %arg10[%c1_129, %c0_130, %c0_131] : memref<2x32x64xbf16, #tpu.memory_space<vmem>>, vector<1x32x64xbf16>
    %348 = vector.shape_cast %347 : vector<1x32x64xbf16> to vector<32x64xbf16>
    %cst_132 = arith.constant dense<0.000000e+00> : vector<16x64xf32>
    %349 = tpu.matmul %346, %348, %cst_132 {dimension_numbers = #tpu.dot_dimension_numbers<[1], [0], [0], [1], [0, 0, 1, 1], [], []>} : vector<16x32xbf16>, vector<32x64xbf16>, vector<16x64xf32> -> vector<16x64xf32>
    %c1_133 = arith.constant 1 : index
    %c0_134 = arith.constant 0 : index
    %c0_135 = arith.constant 0 : index
    %350 = vector.load %arg11[%c1_133, %c0_134, %c0_135] : memref<2x1x64xf32, #tpu.memory_space<vmem>>, vector<1x1x64xf32>
    %351 = vector.shape_cast %350 : vector<1x1x64xf32> to vector<1x64xf32>
    %352 = vector.broadcast %351 : vector<1x64xf32> to vector<16x64xf32>
    %353 = arith.addf %349, %352 : vector<16x64xf32>
    %354 = arith.mulf %353, %353 : vector<16x64xf32>
    %355 = arith.mulf %353, %354 : vector<16x64xf32>
    %cst_136 = arith.constant 4.471500e-02 : f32
    %356 = vector.broadcast %cst_136 : f32 to vector<16x64xf32>
    %357 = arith.mulf %356, %355 : vector<16x64xf32>
    %358 = arith.addf %353, %357 : vector<16x64xf32>
    %cst_137 = arith.constant 0.797884583 : f32
    %359 = vector.broadcast %cst_137 : f32 to vector<16x64xf32>
    %360 = arith.mulf %359, %358 : vector<16x64xf32>
    %361 = math.tanh %360 : vector<16x64xf32>
    %cst_138 = arith.constant 1.000000e+00 : f32
    %362 = vector.broadcast %cst_138 : f32 to vector<16x64xf32>
    %363 = arith.addf %362, %361 : vector<16x64xf32>
    %cst_139 = arith.constant 5.000000e-01 : f32
    %364 = vector.broadcast %cst_139 : f32 to vector<16x64xf32>
    %365 = arith.mulf %364, %363 : vector<16x64xf32>
    %366 = arith.mulf %353, %365 : vector<16x64xf32>
    %367 = arith.truncf %366 : vector<16x64xf32> to vector<16x64xbf16>
    %c1_140 = arith.constant 1 : index
    %c0_141 = arith.constant 0 : index
    %c0_142 = arith.constant 0 : index
    %368 = vector.load %arg12[%c1_140, %c0_141, %c0_142] : memref<2x64x32xbf16, #tpu.memory_space<vmem>>, vector<1x64x32xbf16>
    %369 = vector.shape_cast %368 : vector<1x64x32xbf16> to vector<64x32xbf16>
    %cst_143 = arith.constant dense<0.000000e+00> : vector<16x32xf32>
    %370 = tpu.matmul %367, %369, %cst_143 {dimension_numbers = #tpu.dot_dimension_numbers<[1], [0], [0], [1], [0, 0, 1, 1], [], []>} : vector<16x64xbf16>, vector<64x32xbf16>, vector<16x32xf32> -> vector<16x32xf32>
    %c1_144 = arith.constant 1 : index
    %c0_145 = arith.constant 0 : index
    %c0_146 = arith.constant 0 : index
    %371 = vector.load %arg13[%c1_144, %c0_145, %c0_146] : memref<2x1x32xf32, #tpu.memory_space<vmem>>, vector<1x1x32xf32>
    %372 = vector.shape_cast %371 : vector<1x1x32xf32> to vector<1x32xf32>
    %373 = vector.broadcast %372 : vector<1x32xf32> to vector<16x32xf32>
    %374 = arith.addf %370, %373 : vector<16x32xf32>
    %375 = arith.addf %374, %345 : vector<16x32xf32>
    %c1_147 = arith.constant 1 : index
    %c0_148 = arith.constant 0 : index
    %c0_149 = arith.constant 0 : index
    %376 = vector.load %arg14[%c1_147, %c0_148, %c0_149] : memref<2x1x32xf32, #tpu.memory_space<vmem>>, vector<1x1x32xf32>
    %377 = vector.shape_cast %376 : vector<1x1x32xf32> to vector<1x32xf32>
    %c1_150 = arith.constant 1 : index
    %c0_151 = arith.constant 0 : index
    %c0_152 = arith.constant 0 : index
    %378 = vector.load %arg15[%c1_150, %c0_151, %c0_152] : memref<2x1x32xf32, #tpu.memory_space<vmem>>, vector<1x1x32xf32>
    %379 = vector.shape_cast %378 : vector<1x1x32xf32> to vector<1x32xf32>
    %cst_153 = arith.constant dense<0.000000e+00> : vector<16xf32>
    %380 = vector.multi_reduction <add>, %375, %cst_153 [1] : vector<16x32xf32> to vector<16xf32>
    %381 = vector.shape_cast %380 : vector<16xf32> to vector<16x1xf32>
    %cst_154 = arith.constant 3.200000e+01 : f32
    %382 = vector.broadcast %cst_154 : f32 to vector<16x1xf32>
    %383 = arith.divf %381, %382 : vector<16x1xf32>
    %384 = vector.broadcast %383 : vector<16x1xf32> to vector<16x32xf32>
    %385 = arith.subf %375, %384 : vector<16x32xf32>
    %386 = arith.mulf %385, %385 : vector<16x32xf32>
    %cst_155 = arith.constant dense<0.000000e+00> : vector<16xf32>
    %387 = vector.multi_reduction <add>, %386, %cst_155 [1] : vector<16x32xf32> to vector<16xf32>
    %388 = vector.shape_cast %387 : vector<16xf32> to vector<16x1xf32>
    %cst_156 = arith.constant 3.200000e+01 : f32
    %389 = vector.broadcast %cst_156 : f32 to vector<16x1xf32>
    %390 = arith.divf %388, %389 : vector<16x1xf32>
    %391 = vector.broadcast %383 : vector<16x1xf32> to vector<16x32xf32>
    %392 = arith.subf %375, %391 : vector<16x32xf32>
    %cst_157 = arith.constant 9.99999996E-13 : f32
    %393 = vector.broadcast %cst_157 : f32 to vector<16x1xf32>
    %394 = arith.addf %390, %393 : vector<16x1xf32>
    %395 = math.rsqrt %394 : vector<16x1xf32>
    %396 = vector.broadcast %395 : vector<16x1xf32> to vector<16x32xf32>
    %397 = arith.mulf %392, %396 : vector<16x32xf32>
    %398 = vector.broadcast %377 : vector<1x32xf32> to vector<16x32xf32>
    %399 = arith.mulf %397, %398 : vector<16x32xf32>
    %400 = vector.broadcast %379 : vector<1x32xf32> to vector<16x32xf32>
    %401 = arith.addf %399, %400 : vector<16x32xf32>
    %402 = vector.extract_strided_slice %401 {offsets = [0, 0], sizes = [1, 32], strides = [1, 1]} : vector<16x32xf32> to vector<1x32xf32>
    %403 = vector.extract_strided_slice %401 {offsets = [8, 0], sizes = [1, 32], strides = [1, 1]} : vector<16x32xf32> to vector<1x32xf32>
    %404 = tpu.concatenate %402, %403 in 0 : vector<1x32xf32>, vector<1x32xf32> -> vector<2x32xf32>
    %405 = arith.truncf %404 : vector<2x32xf32> to vector<2x32xbf16>
    %c0_158 = arith.constant 0 : index
    %c0_159 = arith.constant 0 : index
    %406 = vector.load %arg16[%c0_158, %c0_159] : memref<32x32xbf16, #tpu.memory_space<vmem>>, vector<32x32xbf16>
    %cst_160 = arith.constant dense<0.000000e+00> : vector<2x32xf32>
    %407 = tpu.matmul %405, %406, %cst_160 {dimension_numbers = #tpu.dot_dimension_numbers<[1], [0], [0], [1], [0, 0, 1, 1], [], []>} : vector<2x32xbf16>, vector<32x32xbf16>, vector<2x32xf32> -> vector<2x32xf32>
    %c0_161 = arith.constant 0 : index
    %c0_162 = arith.constant 0 : index
    %408 = vector.load %arg17[%c0_161, %c0_162] : memref<1x32xf32, #tpu.memory_space<vmem>>, vector<1x32xf32>
    %409 = vector.broadcast %408 : vector<1x32xf32> to vector<2x32xf32>
    %410 = arith.addf %407, %409 : vector<2x32xf32>
    %411 = math.tanh %410 : vector<2x32xf32>
    %412 = arith.truncf %411 : vector<2x32xf32> to vector<2x32xbf16>
    %c0_163 = arith.constant 0 : index
    %c0_164 = arith.constant 0 : index
    %413 = vector.load %arg18[%c0_163, %c0_164] : memref<32x2xbf16, #tpu.memory_space<vmem>>, vector<32x2xbf16>
    %cst_165 = arith.constant dense<0.000000e+00> : vector<2x2xf32>
    %414 = tpu.matmul %412, %413, %cst_165 {dimension_numbers = #tpu.dot_dimension_numbers<[1], [0], [0], [1], [0, 0, 1, 1], [], []>} : vector<2x32xbf16>, vector<32x2xbf16>, vector<2x2xf32> -> vector<2x2xf32>
    %c0_166 = arith.constant 0 : index
    %c0_167 = arith.constant 0 : index
    %415 = vector.load %arg19[%c0_166, %c0_167] : memref<1x2xf32, #tpu.memory_space<vmem>>, vector<1x2xf32>
    %416 = vector.broadcast %415 : vector<1x2xf32> to vector<2x2xf32>
    %417 = arith.addf %414, %416 : vector<2x2xf32>
    %c0_168 = arith.constant 0 : index
    %c0_169 = arith.constant 0 : index
    %418 = vector.load %arg20[%c0_168, %c0_169] : memref<2x2xf32, #tpu.memory_space<vmem>>, vector<2x2xf32>
    tpu.vector_store %arg20[%c0_168, %c0_169], %417 {strides = array<i32>} : memref<2x2xf32, #tpu.memory_space<vmem>>, vector<2x2xf32>,
    return
  }
}

</mosaic_0001>

<bundles_post_ra>
// kernel: bert_forward.1
= control target key start
LH: loop header
LB: loop body
LE: loop exit
PB: predicated region body
PF: predicated region fallthrough
CT: control target
= control target key end

     0   :  { %s2343_s0 = inlined_call_operand.vmem [shape: f32[16,32], index: 0, kind: input, shape index: {}]   ;;  %s2344_s1 = inlined_call_operand.vmem [shape: f32[16,16], index: 1, kind: input, shape index: {}]   ;;  %s2345_s2 = inlined_call_operand.vmem [shape: f32[1,32], index: 2, kind: input, shape index: {}]   ;;  %s2346_s3 = inlined_call_operand.vmem [shape: f32[1,32], index: 3, kind: input, shape index: {}]   ;;  %s2347_s4 = inlined_call_operand.vmem [shape: bf16[2,32,96], index: 4, kind: input, shape index: {}]   ;;  %s2348_s5 = inlined_call_operand.vmem [shape: f32[2,1,96], index: 5, kind: input, shape index: {}]   ;;  %s2349_s6 = inlined_call_operand.vmem [shape: bf16[2,32,32], index: 6, kind: input, shape index: {}]   ;;  %s2350_s7 = inlined_call_operand.vmem [shape: f32[2,1,32], index: 7, kind: input, shape index: {}]   ;;  %s2351_s8 = inlined_call_operand.vmem [shape: f32[2,1,32], index: 8, kind: input, shape index: {}]   ;;  %s2352_s9 = inlined_call_operand.vmem [shape: f32[2,1,32], index: 9, kind: input, shape index: {}]   ;;  %s2353_s10 = inlined_call_operand.vmem [shape: bf16[2,32,64], index: 10, kind: input, shape index: {}]   ;;  %s2354_s11 = inlined_call_operand.vmem [shape: f32[2,1,64], index: 11, kind: input, shape index: {}]   ;;  %s2355_s12 = inlined_call_operand.vmem [shape: bf16[2,64,32], index: 12, kind: input, shape index: {}]   ;;  %s2356_s13 = inlined_call_operand.vmem [shape: f32[2,1,32], index: 13, kind: input, shape index: {}]   ;;  %s2357_s14 = inlined_call_operand.vmem [shape: f32[2,1,32], index: 14, kind: input, shape index: {}]   ;;  %s2358_s15 = inlined_call_operand.vmem [shape: f32[2,1,32], index: 15, kind: input, shape index: {}]   ;;  %s2359_s16 = inlined_call_operand.vmem [shape: bf16[32,32], index: 16, kind: input, shape index: {}]   ;;  %s2360_s17 = inlined_call_operand.vmem [shape: f32[1,32], index: 17, kind: input, shape index: {}]   ;;  %s2361_s18 = inlined_call_operand.vmem [shape: bf16[32,2], index: 18, kind: input, shape index: {}]   ;;  %s2362_s19 = inlined_call_operand.vmem [shape: f32[1,2], index: 19, kind: input, shape index: {}]   ;;  %s2363_s20 = inlined_call_operand.hbm [shape: f32[2,2], index: 20, kind: output, shape index: {}]  }
   0x1   :  { %2377 = sst [smem:[#allocation5_spill]] %s2343_s0 }
   0x2   :  { %2378 = sst [smem:[#allocation6_spill]] %s2344_s1 }
   0x3   :  { %2379 = sst [smem:[#allocation7_spill]] %s2345_s2 }
   0x4   :  { %2380 = sst [smem:[#allocation8_spill]] %s2346_s3 }
   0x5   :  { %2381 = sst [smem:[#allocation9_spill]] %s2347_s4 }
   0x6   :  { %s2382_s23 = sld [smem:[#allocation5_spill]]  ;;  %vm71_vm0 = vcmask 261120  }
   0xc   :  { %v67_v0 = vld [vmem:[%s2382_s23] sm:$0xff]  ;;  %v68_v1 = vld [vmem:[%s2382_s23 + $0x8] sm:$0xff] }
   0xd   :  { %v72_v2 = vsel %vm71_vm0, %v67_v0, 0.0  ;;  %v75_v3 = vsel %vm71_vm0, %v68_v1, 0.0 }
   0xe   :  { %73 = vadd.xlane.f32.xlu0 %v72_v2 }
   0xf   :  { %25 = vsyncpa [#allocation3], 0  ;;  %v1843_v4 = vmov 32.0   ;;  %s2383_s26 = sld [smem:[#allocation9_spill]]  ;;  %v1703_v53 = vld [vmem:[%s2348_s5] ss:$0 sm:$0xff] }
  0x10   :  { %1721 = vrcp.f32 %v1843_v4  ;;  %s2384_s30 = sld [smem:[#allocation7_spill]]  ;;  %s2376_s24 = smov 72   ;;  %vm177_vm8 = vcmask 64512   ;;  %vm202_vm9 = vcmask 130048   ;;  %vm487_vm10 = vcmask 195584  }
  0x11   :  { %s2385_s1 = sld [smem:[#allocation8_spill]]  ;;  %s1845_s2 = smov 120  }
  0x12   :  { %s1846_s25 = smov 96   ;;  %s1847_s3 = smov 88  }
  0x13   :  { %s2375_s27 = smov 104   ;;  %s1849_s28 = smov 80  }
  0x14   :  { %s2374_s4 = smov 112   ;;  %s2386_s0 = sld [smem:[#allocation6_spill]] }
  0x15   :  { %v1632_v21 = vld [vmem:[%s2383_s26 + $0x8] sm:$0xff]  ;;  %v1631_v23 = vld [vmem:[%s2383_s26] sm:$0xff]  ;;  %s2370_s22 = smov 64   ;;  %s2369_s23 = smov 56  }
  0x16   :  { %76 = vadd.xlane.f32.xlu0 %v75_v3  ;;  %v1722_v5 = vpop.eup %1721  ;;  %165 = vmatpush.bf16.msra.mxu0 %v1632_v21  ;;  %v1701_v42 = vld [vmem:[%s2384_s30] ss:$0 sm:$0xff]  ;;  %s2367_s29 = smov 40   ;;  %s2368_s30 = smov 48  }
  0x17   :  { %v79_v6 = vmul.f32 32.0, %v1722_v5  ;;  %vm83_vm1 = vweird.f32 %v1722_v5  ;;  %v1702_v47 = vld [vmem:[%s2385_s1] ss:$0 sm:$0xff]  ;;  %s2372_s21 = smov 24   ;;  %s2371_s1 = smov 16  }
  0x19   :  { %v80_v7 = vsub.f32 1.0, %v79_v6 }
  0x1a   :  { %166 = vmatpush.bf16.msra.mxu0 %v1631_v23  ;;  %v2030_v6 = vld [vmem:[%s2386_s0] sm:$0xff] }
  0x1b   :  { %v81_v8 = vmul.f32 %v1722_v5, %v80_v7 }
  0x1d   :  { %v82_v9 = vadd.f32 %v1722_v5, %v81_v8 }
  0x1f   :  { %v1972_v10 = vsel %vm83_vm1, %v1722_v5, %v82_v9 }
  0x81   :  { %v74_v11 = vpop.xlane.xlu0 %73 }
  0x82   :  { %v85_v12 = vmul.f32 %v1972_v10, %v74_v11 }
  0x84   :  { %v87_v13 = vsub.f32 %v67_v0, %v85_v12  ;;  %v2037_v12 = vld [vmem:[%s2386_s0 + $0x8] sm:$0xff]  ;;  %s2373_s0 = smov 8  }
  0x86   :  { %v89_v14 = vmul.f32 %v87_v13, %v87_v13 }
  0x88   :  { %v91_v15 = vsel %vm71_vm0, %v89_v14, 0.0 }
  0x89   :  { %92 = vadd.xlane.f32.xlu1 %v91_v15  ;;  %v77_v16 = vpop.xlane.xlu0 %76 }
  0x8a   :  { %v86_v17 = vmul.f32 %v1972_v10, %v77_v16 }
  0x8c   :  { %v88_v18 = vsub.f32 %v68_v1, %v86_v17 }
  0x8e   :  { %v90_v19 = vmul.f32 %v88_v18, %v88_v18 }
  0x90   :  { %v94_v20 = vsel %vm71_vm0, %v90_v19, 0.0 }
  0x91   :  { %95 = vadd.xlane.f32.xlu1 %v94_v20 }
  0xfc   :  { %v93_v22 = vpop.xlane.xlu1 %92 }
  0xfd   :  { %v97_v24 = vmul.f32 %v93_v22, %v1972_v10 }
  0xff   :  { %v99_v25 = vadd.f32 1e-12, %v97_v24 }
 0x101   :  { %1723 = vrsqrt.f32 %v99_v25  ;;  %vm107_vm3 = vweird.f32 %v99_v25 }
 0x104   :  { %v96_v26 = vpop.xlane.xlu1 %95 }
 0x105   :  { %v98_v27 = vmul.f32 %v96_v26, %v1972_v10 }
 0x107   :  { %v1724_v28 = vpop.eup %1723  ;;  %v100_v29 = vadd.f32 1e-12, %v98_v27 }
 0x108   :  { %v102_v30 = vmul.f32 %v1724_v28, %v99_v25  ;;  %vm108_vm2 = vweird.f32 %v1724_v28 }
 0x109   :  { %1725 = vrsqrt.f32 %v100_v29  ;;  %vm109_vm4 = vmor %vm107_vm3, %vm108_vm2  ;;  %vm117_vm6 = vweird.f32 %v100_v29  ;;  %vm679_vm2 = vcmask 523264  }
 0x10a   :  { %v103_v31 = vmul.f32 %v1724_v28, %v102_v30 }
 0x10c   :  { %v104_v32 = vmul.f32 0.5, %v103_v31 }
 0x10e   :  { %v105_v33 = vsub.f32 1.5, %v104_v32 }
 0x10f   :  { %v1726_v34 = vpop.eup %1725 }
 0x110   :  { %v106_v35 = vmul.f32 %v1724_v28, %v105_v33  ;;  %v112_v36 = vmul.f32 %v1726_v34, %v100_v29  ;;  %vm118_vm5 = vweird.f32 %v1726_v34 }
 0x111   :  { %vm119_vm7 = vmor %vm117_vm6, %vm118_vm5 }
 0x112   :  { %v113_v37 = vmul.f32 %v1726_v34, %v112_v36  ;;  %v110_v38 = vsel %vm109_vm4, %v1724_v28, %v106_v35 }
 0x113   :  { %v121_v41 = vmul.f32 %v110_v38, %v87_v13 }
 0x114   :  { %v114_v39 = vmul.f32 0.5, %v113_v37 }
 0x115   :  { %v126_v46 = vmul.f32 %v1701_v42, %v121_v41 }
 0x116   :  { %v115_v40 = vsub.f32 1.5, %v114_v39 }
 0x117   :  { %v1992_v49 = vadd.f32 %v1702_v47, %v126_v46 }
 0x118   :  { %v116_v43 = vmul.f32 %v1726_v34, %v115_v40 }
 0x11a   :  { %v120_v44 = vsel %vm119_vm7, %v1726_v34, %v116_v43 }
 0x11b   :  { %v122_v45 = vmul.f32 %v120_v44, %v88_v18 }
 0x11d   :  { %v127_v48 = vmul.f32 %v1701_v42, %v122_v45 }
 0x11f   :  { %v1994_v50 = vadd.f32 %v1702_v47, %v127_v48 }
 0x121   :  { %v135_v51 = vpack.c.bf16 %v1994_v50, %v1992_v49 }
 0x123   :  { %1489 = vmatmul.msk.bf16.vlgmr.msra.gmra.mxu0 %vm71_vm0, %v135_v51 }
 0x1a0   :  { %v168_v52 = vpop.f32.mrf.mxu0 }
 0x1a1   :  { %v169_v55 = vadd.f32 %v1703_v53, %v168_v52 }
 0x1a8   :  { %v170_v54 = vpop.f32.mrf.mxu0 }
 0x1a9   :  { %v171_v56 = vadd.f32 %v1703_v53, %v170_v54 }
 0x1ab   :  { %v2002_v57 = vpack.c.bf16 %v171_v56, %v169_v55 }
 0x1ad   :  { %390 = vrot.lane.b32.xlu1 %v2002_v57, %s2376_s24  ;;  %246 = vrot.lane.b32.xlu0 %v2002_v57, %s1845_s2 }
 0x1ae   :  { %175 = vrot.lane.b32.xlu2 %v2002_v57, %s1846_s25 }
 0x1b6   :  { %248 = vrot.lane.b32.xlu2 %v2002_v57, %s1847_s3 }
 0x1be   :  { %388 = vrot.lane.b32.xlu2 %v2002_v57, %s2375_s27  ;;  %s2387_s27 = smov 72  }
 0x1c6   :  { %319 = vrot.lane.b32.xlu2 %v2002_v57, %s1849_s28 }
 0x1ce   :  { %317 = vrot.lane.b32.xlu2 %v2002_v57, %s2374_s4  ;;  %s2389_s4 = smov 112  }
 0x208   :  { %v176_v58 = vpop.permute.xlu2 %175 }
 0x209   :  { %v182_v59 = vsel %vm177_vm8, %v176_v58, 0 }
 0x20a   :  { %191 = vmatpush.bf16.xpose.msra.mxu1 %v182_v59 }
 0x210   :  { %v249_v60 = vpop.permute.xlu2 %248 }
 0x211   :  { %1490 = vmatmul.msk.bf16.vlgmr.msra.gmra.mxu1 %vm177_vm8, %v2002_v57  ;;  %v254_v61 = vsel %vm177_vm8, %v249_v60, 0 }
 0x212   :  { %263 = vmatpush.bf16.xpose.msra.mxu3 %v254_v61 }
 0x218   :  { %v389_v62 = vpop.permute.xlu2 %388 }
 0x21f   :  { %v391_v63 = vpop.permute.xlu1 %390  ;;  %v247_v0 = vpop.permute.xlu0 %246 }
 0x220   :  { %v320_v1 = vpop.permute.xlu2 %319  ;;  %1492 = vmatmul.msk.bf16.vlgmr.msra.gmra.mxu3 %vm177_vm8, %v247_v0  ;;  %v396_v2 = vsel %vm177_vm8, %v391_v63, 0 }
 0x221   :  { %v325_v3 = vsel %vm177_vm8, %v320_v1, 0  ;;  %405 = vmatpush.bf16.xpose.msrb.mxu3 %v396_v2 }
 0x222   :  { %334 = vmatpush.bf16.xpose.msrb.mxu0 %v325_v3 }
 0x228   :  { %v318_v4 = vpop.permute.xlu2 %317 }
 0x229   :  { %1494 = vmatmul.msk.bf16.vlgmr.msrb.gmra.mxu0 %vm177_vm8, %v318_v4 }
 0x230   :  { %1496 = vmatmul.msk.bf16.vlgmr.msrb.gmra.mxu3 %vm177_vm8, %v389_v62 }
 0x28e   :  { %v193_v5 = vpop.f32.mrf.mxu1 }
 0x28f   :  { %v198_v7 = vmul.f32 0.35355338, %v193_v5 }
 0x291   :  { %v200_v8 = vadd.f32 %v198_v7, %v2030_v6 }
 0x293   :  { %v203_v9 = vsel %vm202_vm9, %v200_v8, -inf }
 0x294   :  { %204 = vmax.xlane.f32.xlu0 %v203_v9 }
 0x296   :  { %v195_v11 = vpop.f32.mrf.mxu1 }
 0x297   :  { %v199_v13 = vmul.f32 0.35355338, %v195_v11 }
 0x299   :  { %v201_v14 = vadd.f32 %v199_v13, %v2037_v12 }
 0x29b   :  { %v206_v15 = vsel %vm202_vm9, %v201_v14, -inf }
 0x29c   :  { %207 = vmax.xlane.f32.xlu2 %v206_v15 }
 0x2a3   :  { %v265_v16 = vpop.f32.mrf.mxu3 }
 0x2a4   :  { %v270_v17 = vmul.f32 0.35355338, %v265_v16 }
 0x2a6   :  { %v336_v18 = vpop.f32.mrf.mxu0  ;;  %v272_v19 = vadd.f32 %v270_v17, %v2030_v6 }
 0x2a7   :  { %v341_v20 = vmul.f32 0.35355338, %v336_v18 }
 0x2a8   :  { %v274_v21 = vsel %vm202_vm9, %v272_v19, -inf }
 0x2a9   :  { %275 = vmax.xlane.f32.xlu1 %v274_v21  ;;  %v343_v22 = vadd.f32 %v341_v20, %v2030_v6 }
 0x2ab   :  { %v267_v23 = vpop.f32.mrf.mxu3  ;;  %v345_v24 = vsel %vm202_vm9, %v343_v22, -inf }
 0x2ac   :  { %v271_v25 = vmul.f32 0.35355338, %v267_v23  ;;  %346 = vmax.xlane.f32.xlu0 %v345_v24 }
 0x2ae   :  { %v338_v26 = vpop.f32.mrf.mxu0  ;;  %v273_v28 = vadd.f32 %v271_v25, %v2037_v12 }
 0x2af   :  { %v342_v27 = vmul.f32 0.35355338, %v338_v26 }
 0x2b0   :  { %v277_v31 = vsel %vm202_vm9, %v273_v28, -inf }
 0x2b1   :  { %v344_v29 = vadd.f32 %v342_v27, %v2037_v12 }
 0x2b3   :  { %v407_v30 = vpop.f32.mrf.mxu3  ;;  %v348_v32 = vsel %vm202_vm9, %v344_v29, -inf }
 0x2b4   :  { %v412_v33 = vmul.f32 0.35355338, %v407_v30  ;;  %278 = vmax.xlane.f32.xlu0 %v277_v31  ;;  %349 = vmax.xlane.f32.xlu2 %v348_v32 }
 0x2b6   :  { %v414_v34 = vadd.f32 %v412_v33, %v2030_v6 }
 0x2b8   :  { %v416_v36 = vsel %vm202_vm9, %v414_v34, -inf }
 0x2bb   :  { %v409_v35 = vpop.f32.mrf.mxu3 }
 0x2bc   :  { %v413_v37 = vmul.f32 0.35355338, %v409_v35  ;;  %417 = vmax.xlane.f32.xlu2 %v416_v36 }
 0x2be   :  { %v415_v38 = vadd.f32 %v413_v37, %v2037_v12 }
 0x2c0   :  { %v419_v39 = vsel %vm202_vm9, %v415_v38, -inf }
 0x2c1   :  { %420 = vmax.xlane.f32.xlu1 %v419_v39 }
 0x2d4   :  { %226 = vrot.lane.b32.xlu2 %v2002_v57, %s2370_s22 }
 0x2da   :  { %297 = vrot.lane.b32.xlu1 %v2002_v57, %s2369_s23 }
 0x307   :  { %v205_v40 = vpop.xlane.xlu0 %204 }
 0x308   :  { %v209_v41 = vsub.f32 %v200_v8, %v205_v40 }
 0x30a   :  { %v211_v42 = vmul.f32 1.442695, %v209_v41 }
 0x30c   :  { %1727 = vpow2.f32 %v211_v42 }
 0x30f   :  { %v208_v43 = vpop.xlane.xlu2 %207 }
 0x310   :  { %v210_v44 = vsub.f32 %v201_v14, %v208_v43 }
 0x312   :  { %v2057_v45 = vpop.eup %1727  ;;  %v213_v46 = vmul.f32 1.442695, %v210_v44 }
 0x313   :  { %v215_v47 = vsel %vm202_vm9, %v2057_v45, 0.0 }
 0x314   :  { %1729 = vpow2.f32 %v213_v46  ;;  %216 = vadd.xlane.f32.xlu1 %v215_v47 }
 0x31a   :  { %v1730_v48 = vpop.eup %1729 }
 0x31b   :  { %v218_v51 = vsel %vm202_vm9, %v1730_v48, 0.0 }
 0x31c   :  { %219 = vadd.xlane.f32.xlu0 %v218_v51  ;;  %v276_v52 = vpop.xlane.xlu1 %275 }
 0x31d   :  { %v280_v53 = vsub.f32 %v272_v19, %v276_v52 }
 0x31f   :  { %v282_v54 = vmul.f32 1.442695, %v280_v53  ;;  %v347_v55 = vpop.xlane.xlu0 %346 }
 0x320   :  { %v351_v56 = vsub.f32 %v343_v22, %v347_v55 }
 0x321   :  { %1731 = vpow2.f32 %v282_v54 }
 0x322   :  { %v353_v58 = vmul.f32 1.442695, %v351_v56 }
 0x324   :  { %1733 = vpow2.f32 %v353_v58 }
 0x327   :  { %v1732_v59 = vpop.eup %1731  ;;  %v350_v60 = vpop.xlane.xlu2 %349 }
 0x328   :  { %v279_v61 = vpop.xlane.xlu0 %278  ;;  %v352_v62 = vsub.f32 %v344_v29, %v350_v60  ;;  %v286_v63 = vsel %vm202_vm9, %v1732_v59, 0.0 }
 0x329   :  { %287 = vadd.xlane.f32.xlu1 %v286_v63  ;;  %v281_v2 = vsub.f32 %v273_v28, %v279_v61 }
 0x32a   :  { %v2063_v0 = vpop.eup %1733  ;;  %v355_v1 = vmul.f32 1.442695, %v352_v62 }
 0x32b   :  { %v357_v3 = vsel %vm202_vm9, %v2063_v0, 0.0  ;;  %v284_v4 = vmul.f32 1.442695, %v281_v2 }
 0x32c   :  { %358 = vadd.xlane.f32.xlu2 %v357_v3  ;;  %1735 = vpow2.f32 %v355_v1  ;;  %v1634_v3 = vld [vmem:[%s2349_s6 + $0x8] sm:$0xff] }
 0x32d   :  { %1737 = vpow2.f32 %v284_v4  ;;  %520 = vmatpush.bf16.msra.mxu0 %v1634_v3  ;;  %v1633_v4 = vld [vmem:[%s2349_s6] sm:$0xff] }
 0x32e   :  { %v1706_v3 = vld [vmem:[%s2352_s9] ss:$0 sm:$0xff] }
 0x32f   :  { %v418_v5 = vpop.xlane.xlu2 %417 }
 0x330   :  { %v422_v8 = vsub.f32 %v414_v34, %v418_v5 }
 0x331   :  { %521 = vmatpush.bf16.msra.mxu0 %v1633_v4 }
 0x332   :  { %v2067_v7 = vpop.eup %1735  ;;  %v424_v11 = vmul.f32 1.442695, %v422_v8 }
 0x333   :  { %v360_v9 = vsel %vm202_vm9, %v2067_v7, 0.0  ;;  %v1738_v15 = vpop.eup %1737 }
 0x334   :  { %361 = vadd.xlane.f32.xlu0 %v360_v9  ;;  %v421_v14 = vpop.xlane.xlu1 %420  ;;  %1739 = vpow2.f32 %v424_v11  ;;  %v289_v17 = vsel %vm202_vm9, %v1738_v15, 0.0 }
 0x335   :  { %v423_v16 = vsub.f32 %v415_v38, %v421_v14 }
 0x337   :  { %v227_v13 = vpop.permute.xlu2 %226  ;;  %v426_v18 = vmul.f32 1.442695, %v423_v16 }
 0x338   :  { %239 = vmatpush.bf16.msra.mxu2 %v227_v13 }
 0x339   :  { %1741 = vpow2.f32 %v426_v18 }
 0x33a   :  { %v1740_v19 = vpop.eup %1739 }
 0x33b   :  { %v428_v20 = vsel %vm202_vm9, %v1740_v19, 0.0 }
 0x33c   :  { %290 = vadd.xlane.f32.xlu0 %v289_v17 }
 0x33f   :  { %v1742_v21 = vpop.eup %1741 }
 0x340   :  { %v431_v22 = vsel %vm202_vm9, %v1742_v21, 0.0 }
 0x342   :  { %439 = vrot.lane.b32.xlu1 %v2002_v57, %s2367_s29 }
 0x344   :  { %429 = vadd.xlane.f32.xlu0 %v428_v20 }
 0x34c   :  { %v298_v23 = vpop.permute.xlu1 %297  ;;  %432 = vadd.xlane.f32.xlu0 %v431_v22 }
 0x34d   :  { %310 = vmatpush.bf16.msrb.mxu2 %v298_v23 }
 0x360   :  { %368 = vrot.lane.b32.xlu0 %v2002_v57, %s2368_s30 }
 0x387   :  { %v217_v24 = vpop.xlane.xlu1 %216 }
 0x388   :  { %1743 = vrcp.f32 %v217_v24  ;;  %v1704_v24 = vld [vmem:[%s2350_s7] ss:$0 sm:$0xff] }
 0x38e   :  { %v1744_v26 = vpop.eup %1743 }
 0x38f   :  { %v220_v25 = vpop.xlane.xlu0 %219  ;;  %v223_v28 = vmul.f32 %v1744_v26, %v2057_v45 }
 0x390   :  { %1745 = vrcp.f32 %v220_v25 }
 0x396   :  { %v1746_v27 = vpop.eup %1745 }
 0x397   :  { %v224_v29 = vmul.f32 %v1746_v27, %v1730_v48 }
 0x399   :  { %v225_v30 = vpack.c.bf16 %v224_v29, %v223_v28 }
 0x39b   :  { %1491 = vmatmul.msk.bf16.vlgmr.msra.gmra.mxu2 %vm202_vm9, %v225_v30 }
 0x39c   :  { %v288_v32 = vpop.xlane.xlu1 %287 }
 0x39d   :  { %1747 = vrcp.f32 %v288_v32 }
 0x39f   :  { %v359_v43 = vpop.xlane.xlu2 %358 }
 0x3a3   :  { %v1748_v35 = vpop.eup %1747 }
 0x3a4   :  { %v294_v36 = vmul.f32 %v1748_v35, %v1732_v59 }
 0x3a7   :  { %v362_v31 = vpop.xlane.xlu0 %361 }
 0x3af   :  { %v291_v33 = vpop.xlane.xlu0 %290 }
 0x3b0   :  { %1749 = vrcp.f32 %v291_v33 }
 0x3b4   :  { %v440_v34 = vpop.permute.xlu1 %439 }
 0x3b5   :  { %452 = vmatpush.bf16.msra.mxu2 %v440_v34 }
 0x3b6   :  { %v1750_v57 = vpop.eup %1749 }
 0x3b7   :  { %v295_v37 = vmul.f32 %v1750_v57, %v1738_v15  ;;  %v430_v38 = vpop.xlane.xlu0 %429 }
 0x3b8   :  { %1751 = vrcp.f32 %v430_v38 }
 0x3b9   :  { %v296_v39 = vpack.c.bf16 %v295_v37, %v294_v36 }
 0x3bb   :  { %1493 = vmatmul.msk.bf16.vlgmr.msrb.gmra.mxu2 %vm202_vm9, %v296_v39 }
 0x3be   :  { %v1752_v41 = vpop.eup %1751 }
 0x3bf   :  { %v433_v40 = vpop.xlane.xlu0 %432  ;;  %v436_v44 = vmul.f32 %v1752_v41, %v1740_v19 }
 0x3c0   :  { %1753 = vrcp.f32 %v433_v40 }
 0x3c1   :  { %1755 = vrcp.f32 %v362_v31 }
 0x3c2   :  { %1757 = vrcp.f32 %v359_v43  ;;  %v1635_v43 = vld [vmem:[%s2353_s10] sm:$0xff] }
 0x3c6   :  { %v1754_v42 = vpop.eup %1753 }
 0x3c7   :  { %v437_v45 = vmul.f32 %v1754_v42, %v1742_v21  ;;  %v1756_v47 = vpop.eup %1755 }
 0x3c8   :  { %v1758_v48 = vpop.eup %1757  ;;  %v366_v51 = vmul.f32 %v1756_v47, %v2067_v7 }
 0x3c9   :  { %v438_v46 = vpack.c.bf16 %v437_v45, %v436_v44  ;;  %v365_v52 = vmul.f32 %v1758_v48, %v2063_v0 }
 0x3cb   :  { %1497 = vmatmul.msk.bf16.vlgmr.msra.gmra.mxu2 %vm202_vm9, %v438_v46  ;;  %v367_v54 = vpack.c.bf16 %v366_v51, %v365_v52 }
 0x3d2   :  { %v369_v53 = vpop.permute.xlu0 %368 }
 0x3d3   :  { %381 = vmatpush.bf16.msrb.mxu1 %v369_v53 }
 0x3d6   :  { %1495 = vmatmul.msk.bf16.vlgmr.msrb.gmra.mxu1 %vm202_vm9, %v367_v54 }
 0x41e   :  { %v241_v55 = vpop.f32.mrf.mxu2 }
 0x426   :  { %v243_v56 = vpop.f32.mrf.mxu2 }
 0x43e   :  { %v312_v58 = vpop.f32.mrf.mxu2 }
 0x446   :  { %v314_v59 = vpop.f32.mrf.mxu2 }
 0x447   :  { %v1671_v60 = vpack.i.bf16 %v314_v59, %v312_v58 }
 0x449   :  { %1672 = vrot.lane.b32.xlu1 %v1671_v60, %s2373_s0  ;;  %s2394_s0 = smov 8  }
 0x44e   :  { %v454_v61 = vpop.f32.mrf.mxu2 }
 0x453   :  { %v383_v62 = vpop.f32.mrf.mxu1 }
 0x456   :  { %v456_v63 = vpop.f32.mrf.mxu2 }
 0x457   :  { %v1681_v1 = vpack.i.bf16 %v456_v63, %v454_v61  ;;  %v1705_v63 = vld [vmem:[%s2351_s8] ss:$0 sm:$0xff] }
 0x459   :  { %1682 = vrot.lane.b32.xlu0 %v1681_v1, %s2372_s21  ;;  %s2395_s21 = smov 24  }
 0x45b   :  { %v385_v0 = vpop.f32.mrf.mxu1 }
 0x45c   :  { %v1676_v2 = vpack.i.bf16 %v385_v0, %v383_v62 }
 0x45e   :  { %1677 = vrot.lane.b32.xlu1 %v1676_v2, %s2371_s1  ;;  %s2396_s1 = smov 16  }
 0x4bb   :  { %v1673_v5 = vpop.permute.xlu1 %1672 }
 0x4bc   :  { %v1675_v7 = vunpack.i.h.bf16 %v1673_v5  ;;  %v1674_v8 = vunpack.i.l.bf16 %v1673_v5 }
 0x4be   :  { %v484_v15 = vsel %vm177_vm8, %v243_v56, %v1675_v7  ;;  %v483_v16 = vsel %vm177_vm8, %v241_v55, %v1674_v8 }
 0x4cb   :  { %v1683_v9 = vpop.permute.xlu0 %1682 }
 0x4cc   :  { %v1685_v17 = vunpack.i.h.bf16 %v1683_v9  ;;  %v1684_v18 = vunpack.i.l.bf16 %v1683_v9 }
 0x4d0   :  { %v1678_v11 = vpop.permute.xlu1 %1677 }
 0x4d1   :  { %v1680_v13 = vunpack.i.h.bf16 %v1678_v11  ;;  %v1679_v14 = vunpack.i.l.bf16 %v1678_v11 }
 0x4d3   :  { %v486_v19 = vsel %vm202_vm9, %v484_v15, %v1680_v13  ;;  %v485_v20 = vsel %vm202_vm9, %v483_v16, %v1679_v14  ;;  %v1640_v13 = vld [vmem:[%s2355_s12 + $0x18] sm:$0xff]  ;;  %v1639_v14 = vld [vmem:[%s2355_s12 + $0x10] sm:$0xff]  ;;  %v1638_v15 = vld [vmem:[%s2355_s12 + $0x8] sm:$0xff] }
 0x4d4   :  { %v489_v21 = vsel %vm487_vm10, %v486_v19, %v1685_v17  ;;  %v488_v22 = vsel %vm487_vm10, %v485_v20, %v1684_v18  ;;  %687 = vmatpush.bf16.msra.mxu3 %v1640_v13  ;;  %v1707_v16 = vld [vmem:[%s2354_s11] ss:$0 sm:$0xff] }
 0x4d5   :  { %v490_v23 = vpack.c.bf16 %v489_v21, %v488_v22  ;;  %v1637_v17 = vld [vmem:[%s2355_s12] sm:$0xff] }
 0x4d7   :  { %1506 = vmatmul.msk.bf16.vlgmr.msra.gmra.mxu0 %vm71_vm0, %v490_v23 }
 0x4d8   :  { %688 = vmatpush.bf16.msra.mxu3 %v1639_v14 }
 0x4dc   :  { %689 = vmatpush.bf16.msra.mxu3 %v1638_v15 }
 0x4e0   :  { %690 = vmatpush.bf16.msra.mxu3 %v1637_v17 }
 0x554   :  { %v523_v25 = vpop.f32.mrf.mxu0 }
 0x555   :  { %v524_v26 = vadd.f32 %v1704_v24, %v523_v25 }
 0x557   :  { %v528_v27 = vadd.f32 %v524_v26, %v1992_v49 }
 0x559   :  { %v532_v28 = vsel %vm71_vm0, %v528_v27, 0.0 }
 0x55a   :  { %533 = vadd.xlane.f32.xlu1 %v532_v28 }
 0x55c   :  { %v525_v29 = vpop.f32.mrf.mxu0 }
 0x55d   :  { %v526_v30 = vadd.f32 %v1704_v24, %v525_v29 }
 0x55f   :  { %v529_v31 = vadd.f32 %v526_v30, %v1994_v50  ;;  %v1636_v50 = vld [vmem:[%s2353_s10 + $0x8] sm:$0xff] }
 0x560   :  { %616 = vmatpush.bf16.msra.mxu1 %v1636_v50 }
 0x561   :  { %v535_v32 = vsel %vm71_vm0, %v529_v31, 0.0 }
 0x562   :  { %536 = vadd.xlane.f32.xlu0 %v535_v32 }
 0x564   :  { %617 = vmatpush.bf16.msra.mxu1 %v1635_v43 }
 0x5cd   :  { %v534_v33 = vpop.xlane.xlu1 %533 }
 0x5ce   :  { %v538_v34 = vmul.f32 %v534_v33, %v1972_v10 }
 0x5d0   :  { %v540_v35 = vsub.f32 %v528_v27, %v538_v34 }
 0x5d2   :  { %v542_v57 = vmul.f32 %v540_v35, %v540_v35 }
 0x5d4   :  { %v544_v36 = vsel %vm71_vm0, %v542_v57, 0.0 }
 0x5d5   :  { %v537_v37 = vpop.xlane.xlu0 %536  ;;  %545 = vadd.xlane.f32.xlu2 %v544_v36 }
 0x5d6   :  { %v539_v49 = vmul.f32 %v537_v37, %v1972_v10 }
 0x5d8   :  { %v541_v38 = vsub.f32 %v529_v31, %v539_v49 }
 0x5da   :  { %v543_v39 = vmul.f32 %v541_v38, %v541_v38 }
 0x5dc   :  { %v547_v40 = vsel %vm71_vm0, %v543_v39, 0.0  ;;  %v1708_v39 = vld [vmem:[%s2356_s13] ss:$0 sm:$0xff] }
 0x5dd   :  { %548 = vadd.xlane.f32.xlu2 %v547_v40 }
 0x648   :  { %v546_v41 = vpop.xlane.xlu2 %545 }
 0x649   :  { %v550_v42 = vmul.f32 %v546_v41, %v1972_v10 }
 0x64b   :  { %v552_v44 = vadd.f32 1e-12, %v550_v42 }
 0x64d   :  { %1759 = vrsqrt.f32 %v552_v44  ;;  %vm560_vm12 = vweird.f32 %v552_v44 }
 0x650   :  { %v549_v45 = vpop.xlane.xlu2 %548 }
 0x651   :  { %v551_v46 = vmul.f32 %v549_v45, %v1972_v10 }
 0x653   :  { %v1760_v47 = vpop.eup %1759  ;;  %v553_v48 = vadd.f32 1e-12, %v551_v46 }
 0x654   :  { %v555_v51 = vmul.f32 %v1760_v47, %v552_v44  ;;  %vm561_vm11 = vweird.f32 %v1760_v47 }
 0x655   :  { %1761 = vrsqrt.f32 %v553_v48  ;;  %vm562_vm13 = vmor %vm560_vm12, %vm561_vm11  ;;  %vm570_vm15 = vweird.f32 %v553_v48 }
 0x656   :  { %v556_v52 = vmul.f32 %v1760_v47, %v555_v51 }
 0x658   :  { %v557_v53 = vmul.f32 0.5, %v556_v52 }
 0x65a   :  { %v558_v54 = vsub.f32 1.5, %v557_v53 }
 0x65b   :  { %v1762_v55 = vpop.eup %1761 }
 0x65c   :  { %v559_v56 = vmul.f32 %v1760_v47, %v558_v54  ;;  %v565_v58 = vmul.f32 %v1762_v55, %v553_v48  ;;  %vm571_vm14 = vweird.f32 %v1762_v55 }
 0x65d   :  { %vm572_vm1 = vmor %vm570_vm15, %vm571_vm14 }
 0x65e   :  { %v566_v59 = vmul.f32 %v1762_v55, %v565_v58  ;;  %v563_v60 = vsel %vm562_vm13, %v1760_v47, %v559_v56 }
 0x65f   :  { %v574_v1 = vmul.f32 %v563_v60, %v540_v35  ;;  %v1642_v60 = vld [vmem:[%s2383_s26 + $0x18] sm:$0xff] }
 0x660   :  { %v567_v61 = vmul.f32 0.5, %v566_v59  ;;  %787 = vmatpush.bf16.msrb.mxu2 %v1642_v60 }
 0x661   :  { %v579_v4 = vmul.f32 %v1705_v63, %v574_v1 }
 0x662   :  { %v568_v62 = vsub.f32 1.5, %v567_v61 }
 0x663   :  { %v584_v8 = vadd.f32 %v1706_v3, %v579_v4 }
 0x664   :  { %v569_v0 = vmul.f32 %v1762_v55, %v568_v62 }
 0x666   :  { %v573_v2 = vsel %vm572_vm1, %v1762_v55, %v569_v0 }
 0x667   :  { %v575_v5 = vmul.f32 %v573_v2, %v541_v38 }
 0x669   :  { %v580_v7 = vmul.f32 %v1705_v63, %v575_v5  ;;  %v1641_v63 = vld [vmem:[%s2383_s26 + $0x10] sm:$0xff] }
 0x66a   :  { %788 = vmatpush.bf16.msrb.mxu2 %v1641_v63 }
 0x66b   :  { %v585_v9 = vadd.f32 %v1706_v3, %v580_v7 }
 0x66d   :  { %v586_v11 = vpack.c.bf16 %v585_v9, %v584_v8 }
 0x66f   :  { %1515 = vmatmul.msk.bf16.vlgmr.msra.gmra.mxu1 %vm71_vm0, %v586_v11 }
 0x6ec   :  { %v619_v18 = vpop.f32.mrf.mxu1 }
 0x6ed   :  { %v620_v19 = vadd.f32 %v1707_v16, %v619_v18 }
 0x6ef   :  { %v624_v20 = vmul.f32 %v620_v19, %v620_v19 }
 0x6f1   :  { %v626_v21 = vmul.f32 %v624_v20, %v620_v19 }
 0x6f3   :  { %v628_v22 = vmul.f32 0.044715, %v626_v21 }
 0x6f4   :  { %v621_v23 = vpop.f32.mrf.mxu1 }
 0x6f5   :  { %v630_v24 = vadd.f32 %v628_v22, %v620_v19  ;;  %v622_v25 = vadd.f32 %v1707_v16, %v621_v23  ;;  %v1710_v23 = vld [vmem:[%s2358_s15] ss:$0 sm:$0xff] }
 0x6f7   :  { %v632_v26 = vmul.f32 0.7978846, %v630_v24  ;;  %v625_v27 = vmul.f32 %v622_v25, %v622_v25 }
 0x6f9   :  { %v627_v28 = vmul.f32 %v625_v27, %v622_v25  ;;  %1763 = vtanh.f32 %v632_v26 }
 0x6fb   :  { %v629_v29 = vmul.f32 0.044715, %v627_v28 }
 0x6fd   :  { %v631_v30 = vadd.f32 %v629_v29, %v622_v25 }
 0x6ff   :  { %v633_v31 = vmul.f32 0.7978846, %v631_v30  ;;  %v1764_v32 = vpop.eup %1763 }
 0x700   :  { %v636_v33 = vadd.f32 1.0, %v1764_v32 }
 0x701   :  { %1765 = vtanh.f32 %v633_v31  ;;  %v1711_v31 = vld [vmem:[%s2348_s5 + $0x1] ss:$0 sm:$0xff]  ;;  %s2388_s5 = smov 104  }
 0x702   :  { %v638_v35 = vmul.f32 0.5, %v636_v33 }
 0x704   :  { %v640_v37 = vmul.f32 %v638_v35, %v620_v19  ;;  %v1709_v19 = vld [vmem:[%s2357_s14] ss:$0 sm:$0xff] }
 0x707   :  { %v1766_v34 = vpop.eup %1765 }
 0x708   :  { %v637_v57 = vadd.f32 1.0, %v1766_v34 }
 0x70a   :  { %v639_v36 = vmul.f32 0.5, %v637_v57 }
 0x70c   :  { %v641_v49 = vmul.f32 %v639_v36, %v622_v25 }
 0x70e   :  { %v642_v38 = vpack.c.bf16 %v641_v49, %v640_v37 }
 0x710   :  { %1532 = vmatmul.msk.bf16.vlgmr.msra.gmra.mxu3 %vm679_vm2, %v642_v38 }
 0x793   :  { %v692_v40 = vpop.f32.mrf.mxu3 }
 0x794   :  { %v693_v50 = vadd.f32 %v1708_v39, %v692_v40 }
 0x796   :  { %v697_v41 = vadd.f32 %v693_v50, %v584_v8 }
 0x798   :  { %v701_v42 = vsel %vm71_vm0, %v697_v41, 0.0 }
 0x799   :  { %702 = vadd.xlane.f32.xlu2 %v701_v42 }
 0x79b   :  { %v694_v43 = vpop.f32.mrf.mxu3 }
 0x79c   :  { %v695_v44 = vadd.f32 %v1708_v39, %v694_v43 }
 0x79e   :  { %v698_v45 = vadd.f32 %v695_v44, %v585_v9 }
 0x7a0   :  { %v704_v46 = vsel %vm71_vm0, %v698_v45, 0.0 }
 0x7a1   :  { %705 = vadd.xlane.f32.xlu2 %v704_v46 }
 0x80c   :  { %v703_v47 = vpop.xlane.xlu2 %702 }
 0x80d   :  { %v707_v48 = vmul.f32 %v703_v47, %v1972_v10 }
 0x80f   :  { %v709_v51 = vsub.f32 %v697_v41, %v707_v48 }
 0x811   :  { %v711_v52 = vmul.f32 %v709_v51, %v709_v51 }
 0x813   :  { %v713_v53 = vsel %vm71_vm0, %v711_v52, 0.0 }
 0x814   :  { %714 = vadd.xlane.f32.xlu2 %v713_v53  ;;  %v706_v54 = vpop.xlane.xlu2 %705 }
 0x815   :  { %v708_v55 = vmul.f32 %v706_v54, %v1972_v10 }
 0x817   :  { %v710_v56 = vsub.f32 %v698_v45, %v708_v55 }
 0x819   :  { %v712_v58 = vmul.f32 %v710_v56, %v710_v56 }
 0x81b   :  { %v716_v59 = vsel %vm71_vm0, %v712_v58, 0.0 }
 0x81c   :  { %717 = vadd.xlane.f32.xlu1 %v716_v59 }
 0x887   :  { %v715_v61 = vpop.xlane.xlu2 %714 }
 0x888   :  { %v719_v62 = vmul.f32 %v715_v61, %v1972_v10 }
 0x88a   :  { %v721_v1 = vadd.f32 1e-12, %v719_v62 }
 0x88c   :  { %1767 = vrsqrt.f32 %v721_v1  ;;  %vm729_vm4 = vweird.f32 %v721_v1 }
 0x88f   :  { %v718_v0 = vpop.xlane.xlu1 %717 }
 0x890   :  { %v720_v2 = vmul.f32 %v718_v0, %v1972_v10 }
 0x892   :  { %v1768_v3 = vpop.eup %1767  ;;  %v722_v4 = vadd.f32 1e-12, %v720_v2 }
 0x893   :  { %v724_v5 = vmul.f32 %v1768_v3, %v721_v1  ;;  %vm730_vm3 = vweird.f32 %v1768_v3 }
 0x894   :  { %1769 = vrsqrt.f32 %v722_v4  ;;  %vm731_vm5 = vmor %vm729_vm4, %vm730_vm3  ;;  %vm739_vm7 = vweird.f32 %v722_v4 }
 0x895   :  { %v725_v7 = vmul.f32 %v1768_v3, %v724_v5 }
 0x897   :  { %v726_v8 = vmul.f32 0.5, %v725_v7 }
 0x899   :  { %v727_v9 = vsub.f32 1.5, %v726_v8 }
 0x89a   :  { %v1770_v11 = vpop.eup %1769 }
 0x89b   :  { %v728_v13 = vmul.f32 %v1768_v3, %v727_v9  ;;  %v734_v14 = vmul.f32 %v1770_v11, %v722_v4  ;;  %vm740_vm6 = vweird.f32 %v1770_v11 }
 0x89c   :  { %vm741_vm11 = vmor %vm739_vm7, %vm740_vm6  ;;  %vm1386_vm6 = vcmask 1040384   ;;  %vm1463_vm7 = vcmask 9216  }
 0x89d   :  { %v735_v15 = vmul.f32 %v1770_v11, %v734_v14  ;;  %v732_v16 = vsel %vm731_vm5, %v1768_v3, %v728_v13 }
 0x89e   :  { %v743_v20 = vmul.f32 %v732_v16, %v709_v51 }
 0x89f   :  { %v736_v17 = vmul.f32 0.5, %v735_v15 }
 0x8a0   :  { %v748_v24 = vmul.f32 %v1709_v19, %v743_v20 }
 0x8a1   :  { %v737_v18 = vsub.f32 1.5, %v736_v17 }
 0x8a2   :  { %v2166_v27 = vadd.f32 %v1710_v23, %v748_v24 }
 0x8a3   :  { %v738_v21 = vmul.f32 %v1770_v11, %v737_v18 }
 0x8a5   :  { %v742_v22 = vsel %vm741_vm11, %v1770_v11, %v738_v21 }
 0x8a6   :  { %v744_v25 = vmul.f32 %v742_v22, %v710_v56 }
 0x8a8   :  { %v749_v26 = vmul.f32 %v1709_v19, %v744_v25 }
 0x8aa   :  { %v2168_v28 = vadd.f32 %v1710_v23, %v749_v26 }
 0x8ac   :  { %v755_v29 = vpack.c.bf16 %v2168_v28, %v2166_v27 }
 0x8ae   :  { %1546 = vmatmul.msk.bf16.vlgmr.msrb.gmra.mxu2 %vm71_vm0, %v755_v29 }
 0x931   :  { %v790_v30 = vpop.f32.mrf.mxu2 }
 0x932   :  { %v791_v33 = vadd.f32 %v1711_v31, %v790_v30 }
 0x939   :  { %v792_v32 = vpop.f32.mrf.mxu2 }
 0x93a   :  { %v793_v34 = vadd.f32 %v1711_v31, %v792_v32 }
 0x93c   :  { %v2176_v35 = vpack.c.bf16 %v793_v34, %v791_v33 }
 0x93e   :  { %797 = vrot.lane.b32.xlu1 %v2176_v35, %s1846_s25  ;;  %866 = vrot.lane.b32.xlu0 %v2176_v35, %s1845_s2  ;;  %s2390_s2 = smov 64   ;;  %s2391_s25 = smov 56  }
 0x93f   :  { %868 = vrot.lane.b32.xlu2 %v2176_v35, %s1847_s3  ;;  %s2392_s3 = smov 48  }
 0x946   :  { %939 = vrot.lane.b32.xlu1 %v2176_v35, %s1849_s28  ;;  %1010 = vrot.lane.b32.xlu0 %v2176_v35, %s2387_s27  ;;  %s2393_s28 = smov 40  }
 0x947   :  { %1008 = vrot.lane.b32.xlu2 %v2176_v35, %s2388_s5 }
 0x94e   :  { %937 = vrot.lane.b32.xlu0 %v2176_v35, %s2389_s4 }
 0x999   :  { %v869_v57 = vpop.permute.xlu2 %868 }
 0x99a   :  { %v874_v36 = vsel %vm177_vm8, %v869_v57, 0 }
 0x99b   :  { %883 = vmatpush.bf16.xpose.msrb.mxu3 %v874_v36 }
 0x9a1   :  { %v1009_v42 = vpop.permute.xlu2 %1008 }
 0x9b0   :  { %v798_v37 = vpop.permute.xlu1 %797  ;;  %v867_v49 = vpop.permute.xlu0 %866 }
 0x9b1   :  { %v803_v38 = vsel %vm177_vm8, %v798_v37, 0  ;;  %1549 = vmatmul.msk.bf16.vlgmr.msrb.gmra.mxu3 %vm177_vm8, %v867_v49 }
 0x9b2   :  { %812 = vmatpush.bf16.xpose.msrb.mxu0 %v803_v38 }
 0x9b8   :  { %v940_v39 = vpop.permute.xlu1 %939  ;;  %v1011_v40 = vpop.permute.xlu0 %1010 }
 0x9b9   :  { %v945_v50 = vsel %vm177_vm8, %v940_v39, 0  ;;  %v1016_v41 = vsel %vm177_vm8, %v1011_v40, 0  ;;  %1547 = vmatmul.msk.bf16.vlgmr.msrb.gmra.mxu0 %vm177_vm8, %v2176_v35 }
 0x9ba   :  { %954 = vmatpush.bf16.xpose.msra.mxu0 %v945_v50  ;;  %1025 = vmatpush.bf16.xpose.msra.mxu3 %v1016_v41 }
 0x9c0   :  { %v938_v43 = vpop.permute.xlu0 %937 }
 0x9c1   :  { %1553 = vmatmul.msk.bf16.vlgmr.msra.gmra.mxu3 %vm177_vm8, %v1009_v42 }
 0x9c9   :  { %1551 = vmatmul.msk.bf16.vlgmr.msra.gmra.mxu0 %vm177_vm8, %v938_v43 }
 0xa34   :  { %v885_v44 = vpop.f32.mrf.mxu3 }
 0xa35   :  { %v890_v45 = vmul.f32 0.35355338, %v885_v44 }
 0xa36   :  { %v814_v46 = vpop.f32.mrf.mxu0 }
 0xa37   :  { %v819_v47 = vmul.f32 0.35355338, %v814_v46  ;;  %v892_v48 = vadd.f32 %v890_v45, %v2030_v6 }
 0xa39   :  { %v894_v51 = vsel %vm202_vm9, %v892_v48, -inf  ;;  %v821_v52 = vadd.f32 %v819_v47, %v2030_v6 }
 0xa3a   :  { %895 = vmax.xlane.f32.xlu2 %v894_v51 }
 0xa3b   :  { %v823_v53 = vsel %vm202_vm9, %v821_v52, -inf }
 0xa3c   :  { %824 = vmax.xlane.f32.xlu0 %v823_v53  ;;  %v887_v54 = vpop.f32.mrf.mxu3 }
 0xa3d   :  { %v891_v55 = vmul.f32 0.35355338, %v887_v54 }
 0xa3e   :  { %v816_v56 = vpop.f32.mrf.mxu0 }
 0xa3f   :  { %v820_v58 = vmul.f32 0.35355338, %v816_v56  ;;  %v893_v59 = vadd.f32 %v891_v55, %v2037_v12 }
 0xa41   :  { %v897_v60 = vsel %vm202_vm9, %v893_v59, -inf  ;;  %v822_v61 = vadd.f32 %v820_v58, %v2037_v12 }
 0xa42   :  { %898 = vmax.xlane.f32.xlu1 %v897_v60 }
 0xa43   :  { %v826_v62 = vsel %vm202_vm9, %v822_v61, -inf }
 0xa44   :  { %827 = vmax.xlane.f32.xlu2 %v826_v62  ;;  %v1027_v63 = vpop.f32.mrf.mxu3 }
 0xa45   :  { %v1032_v1 = vmul.f32 0.35355338, %v1027_v63 }
 0xa46   :  { %v956_v0 = vpop.f32.mrf.mxu0 }
 0xa47   :  { %v961_v2 = vmul.f32 0.35355338, %v956_v0  ;;  %v1034_v3 = vadd.f32 %v1032_v1, %v2030_v6 }
 0xa49   :  { %v1036_v4 = vsel %vm202_vm9, %v1034_v3, -inf  ;;  %v963_v5 = vadd.f32 %v961_v2, %v2030_v6 }
 0xa4a   :  { %1037 = vmax.xlane.f32.xlu1 %v1036_v4 }
 0xa4b   :  { %v965_v7 = vsel %vm202_vm9, %v963_v5, -inf }
 0xa4c   :  { %966 = vmax.xlane.f32.xlu2 %v965_v7  ;;  %v1029_v8 = vpop.f32.mrf.mxu3 }
 0xa4d   :  { %v1033_v9 = vmul.f32 0.35355338, %v1029_v8 }
 0xa4e   :  { %v958_v11 = vpop.f32.mrf.mxu0 }
 0xa4f   :  { %v962_v13 = vmul.f32 0.35355338, %v958_v11  ;;  %v1035_v14 = vadd.f32 %v1033_v9, %v2037_v12 }
 0xa51   :  { %v1039_v15 = vsel %vm202_vm9, %v1035_v14, -inf  ;;  %v964_v16 = vadd.f32 %v962_v13, %v2037_v12 }
 0xa52   :  { %1040 = vmax.xlane.f32.xlu0 %v1039_v15 }
 0xa53   :  { %v968_v17 = vsel %vm202_vm9, %v964_v16, -inf }
 0xa54   :  { %969 = vmax.xlane.f32.xlu1 %v968_v17 }
 0xaad   :  { %v896_v18 = vpop.xlane.xlu2 %895 }
 0xaae   :  { %v900_v6 = vsub.f32 %v892_v48, %v896_v18 }
 0xaaf   :  { %v825_v19 = vpop.xlane.xlu0 %824 }
 0xab0   :  { %v902_v20 = vmul.f32 1.442695, %v900_v6  ;;  %v829_v21 = vsub.f32 %v821_v52, %v825_v19 }
 0xab2   :  { %1771 = vpow2.f32 %v902_v20  ;;  %v831_v22 = vmul.f32 1.442695, %v829_v21 }
 0xab4   :  { %1773 = vpow2.f32 %v831_v22 }
 0xab5   :  { %v899_v23 = vpop.xlane.xlu1 %898 }
 0xab6   :  { %v901_v24 = vsub.f32 %v893_v59, %v899_v23 }
 0xab7   :  { %v828_v25 = vpop.xlane.xlu2 %827 }
 0xab8   :  { %v1772_v26 = vpop.eup %1771  ;;  %v904_v29 = vmul.f32 1.442695, %v901_v24  ;;  %v830_v30 = vsub.f32 %v822_v61, %v828_v25 }
 0xab9   :  { %v906_v12 = vsel %vm202_vm9, %v1772_v26, 0.0 }
 0xaba   :  { %v2218_v31 = vpop.eup %1773  ;;  %1775 = vpow2.f32 %v904_v29  ;;  %v833_v32 = vmul.f32 1.442695, %v830_v30  ;;  %907 = vadd.xlane.f32.xlu0 %v906_v12 }
 0xabb   :  { %v835_v33 = vsel %vm202_vm9, %v2218_v31, 0.0 }
 0xabc   :  { %1777 = vpow2.f32 %v833_v32  ;;  %836 = vadd.xlane.f32.xlu1 %v835_v33 }
 0xabd   :  { %v1038_v34 = vpop.xlane.xlu1 %1037 }
 0xabe   :  { %v1042_v39 = vsub.f32 %v1034_v3, %v1038_v34 }
 0xabf   :  { %v967_v57 = vpop.xlane.xlu2 %966 }
 0xac0   :  { %v1776_v36 = vpop.eup %1775  ;;  %v971_v37 = vsub.f32 %v963_v5, %v967_v57  ;;  %v1044_v41 = vmul.f32 1.442695, %v1042_v39  ;;  %v1644_v39 = vld [vmem:[%s2349_s6 + $0x18] sm:$0xff] }
 0xac1   :  { %v909_v49 = vsel %vm202_vm9, %v1776_v36, 0.0  ;;  %1141 = vmatpush.bf16.msrb.mxu0 %v1644_v39 }
 0xac2   :  { %v1778_v38 = vpop.eup %1777  ;;  %v973_v40 = vmul.f32 1.442695, %v971_v37  ;;  %910 = vadd.xlane.f32.xlu2 %v909_v49 }
 0xac3   :  { %v838_v50 = vsel %vm202_vm9, %v1778_v38, 0.0 }
 0xac4   :  { %1779 = vpow2.f32 %v973_v40  ;;  %839 = vadd.xlane.f32.xlu0 %v838_v50  ;;  %v1643_v40 = vld [vmem:[%s2349_s6 + $0x10] sm:$0xff] }
 0xac5   :  { %v1041_v42 = vpop.xlane.xlu0 %1040  ;;  %1781 = vpow2.f32 %v1044_v41  ;;  %1142 = vmatpush.bf16.msrb.mxu0 %v1643_v40 }
 0xac6   :  { %v1043_v44 = vsub.f32 %v1035_v14, %v1041_v42 }
 0xac7   :  { %v970_v53 = vpop.xlane.xlu1 %969 }
 0xac8   :  { %v1046_v46 = vmul.f32 1.442695, %v1043_v44  ;;  %v972_v54 = vsub.f32 %v964_v16, %v970_v53 }
 0xaca   :  { %v2224_v43 = vpop.eup %1779  ;;  %1783 = vpow2.f32 %v1046_v46  ;;  %v975_v55 = vmul.f32 1.442695, %v972_v54 }
 0xacb   :  { %v977_v45 = vsel %vm202_vm9, %v2224_v43, 0.0  ;;  %v1782_v47 = vpop.eup %1781 }
 0xacc   :  { %978 = vadd.xlane.f32.xlu0 %v977_v45  ;;  %v1048_v48 = vsel %vm202_vm9, %v1782_v47, 0.0  ;;  %1785 = vpow2.f32 %v975_v55 }
 0xad0   :  { %v1784_v51 = vpop.eup %1783 }
 0xad1   :  { %v1051_v52 = vsel %vm202_vm9, %v1784_v51, 0.0 }
 0xad2   :  { %v1786_v56 = vpop.eup %1785 }
 0xad3   :  { %v980_v58 = vsel %vm202_vm9, %v1786_v56, 0.0 }
 0xad4   :  { %1049 = vadd.xlane.f32.xlu0 %v1048_v48 }
 0xad5   :  { %846 = vrot.lane.b32.xlu1 %v2176_v35, %s2390_s2 }
 0xada   :  { %917 = vrot.lane.b32.xlu2 %v2176_v35, %s2391_s25 }
 0xadc   :  { %1052 = vadd.xlane.f32.xlu0 %v1051_v52 }
 0xadd   :  { %988 = vrot.lane.b32.xlu1 %v2176_v35, %s2392_s3 }
 0xaf0   :  { %1059 = vrot.lane.b32.xlu0 %v2176_v35, %s2393_s28  ;;  %s1858_s28 = smov [#allocation2]  }
 0xb03   :  { %981 = vadd.xlane.f32.xlu2 %v980_v58 }
 0xb2d   :  { %v908_v59 = vpop.xlane.xlu0 %907 }
 0xb2e   :  { %1787 = vrcp.f32 %v908_v59  ;;  %v1712_v59 = vld [vmem:[%s2350_s7 + $0x1] ss:$0 sm:$0xff] }
 0xb2f   :  { %v837_v63 = vpop.xlane.xlu1 %836 }
 0xb34   :  { %v1788_v62 = vpop.eup %1787 }
 0xb35   :  { %v911_v60 = vpop.xlane.xlu2 %910  ;;  %v914_v0 = vmul.f32 %v1788_v62, %v1772_v26 }
 0xb36   :  { %1789 = vrcp.f32 %v911_v60 }
 0xb37   :  { %v840_v61 = vpop.xlane.xlu0 %839 }
 0xb38   :  { %1791 = vrcp.f32 %v840_v61 }
 0xb39   :  { %1793 = vrcp.f32 %v837_v63 }
 0xb3c   :  { %v1790_v1 = vpop.eup %1789 }
 0xb3d   :  { %v915_v2 = vmul.f32 %v1790_v1, %v1776_v36  ;;  %v918_v3 = vpop.permute.xlu2 %917 }
 0xb3e   :  { %930 = vmatpush.bf16.msra.mxu2 %v918_v3  ;;  %v1792_v5 = vpop.eup %1791 }
 0xb3f   :  { %v916_v35 = vpack.c.bf16 %v915_v2, %v914_v0  ;;  %v979_v4 = vpop.xlane.xlu0 %978  ;;  %v1794_v7 = vpop.eup %1793  ;;  %v844_v8 = vmul.f32 %v1792_v5, %v1778_v38 }
 0xb40   :  { %v843_v9 = vmul.f32 %v1794_v7, %v2218_v31 }
 0xb41   :  { %1550 = vmatmul.msk.bf16.vlgmr.msra.gmra.mxu2 %vm202_vm9, %v916_v35 }
 0xb42   :  { %v845_v13 = vpack.c.bf16 %v844_v8, %v843_v9 }
 0xb47   :  { %v847_v11 = vpop.permute.xlu1 %846  ;;  %v1050_v14 = vpop.xlane.xlu0 %1049 }
 0xb48   :  { %859 = vmatpush.bf16.msrb.mxu1 %v847_v11 }
 0xb4b   :  { %1548 = vmatmul.msk.bf16.vlgmr.msrb.gmra.mxu1 %vm202_vm9, %v845_v13 }
 0xb4f   :  { %v989_v15 = vpop.permute.xlu1 %988  ;;  %v1053_v16 = vpop.xlane.xlu0 %1052 }
 0xb50   :  { %1001 = vmatpush.bf16.msra.mxu1 %v989_v15  ;;  %1795 = vrcp.f32 %v1053_v16 }
 0xb51   :  { %1797 = vrcp.f32 %v1050_v14 }
 0xb52   :  { %1799 = vrcp.f32 %v979_v4 }
 0xb56   :  { %v1796_v17 = vpop.eup %1795 }
 0xb57   :  { %v1798_v18 = vpop.eup %1797  ;;  %v1057_v6 = vmul.f32 %v1796_v17, %v1784_v51 }
 0xb58   :  { %v1056_v19 = vmul.f32 %v1798_v18, %v1782_v47  ;;  %v1800_v23 = vpop.eup %1799  ;;  %v1645_v18 = vld [vmem:[%s2353_s10 + $0x10] sm:$0xff] }
 0xb59   :  { %v985_v25 = vmul.f32 %v1800_v23, %v2224_v43 }
 0xb5a   :  { %v1058_v21 = vpack.c.bf16 %v1057_v6, %v1056_v19 }
 0xb62   :  { %v1060_v20 = vpop.permute.xlu0 %1059 }
 0xb63   :  { %1072 = vmatpush.bf16.msrb.mxu2 %v1060_v20 }
 0xb66   :  { %1554 = vmatmul.msk.bf16.vlgmr.msrb.gmra.mxu2 %vm202_vm9, %v1058_v21 }
 0xb76   :  { %v982_v22 = vpop.xlane.xlu2 %981 }
 0xb77   :  { %1801 = vrcp.f32 %v982_v22 }
 0xb7d   :  { %v1802_v24 = vpop.eup %1801 }
 0xb7e   :  { %v986_v26 = vmul.f32 %v1802_v24, %v1786_v56 }
 0xb80   :  { %v987_v29 = vpack.c.bf16 %v986_v26, %v985_v25 }
 0xb82   :  { %1552 = vmatmul.msk.bf16.vlgmr.msra.gmra.mxu1 %vm202_vm9, %v987_v29 }
 0xbc4   :  { %v932_v30 = vpop.f32.mrf.mxu2 }
 0xbc8   :  { %v861_v33 = vpop.f32.mrf.mxu1 }
 0xbcc   :  { %v934_v12 = vpop.f32.mrf.mxu2 }
 0xbcd   :  { %v1686_v31 = vpack.i.bf16 %v934_v12, %v932_v30 }
 0xbcf   :  { %1687 = vrot.lane.b32.xlu1 %v1686_v31, %s2394_s0 }
 0xbd0   :  { %v863_v36 = vpop.f32.mrf.mxu1 }
 0xbe9   :  { %v1074_v32 = vpop.f32.mrf.mxu2 }
 0xbf1   :  { %v1076_v34 = vpop.f32.mrf.mxu2 }
 0xbf2   :  { %v1696_v57 = vpack.i.bf16 %v1076_v34, %v1074_v32  ;;  %v1713_v34 = vld [vmem:[%s2351_s8 + $0x1] ss:$0 sm:$0xff]  ;;  %s1470_s8 = sshll.u32 %s1858_s28, 4  ;;  %s1471_s8 = int_to_ptr.vmem [resolvable:$true] %s1470_s8 }
 0xbf4   :  { %1697 = vrot.lane.b32.xlu0 %v1696_v57, %s2395_s21  ;;  %s1472_s21 = sshll.u32 %s2363_s20, 4  ;;  %s1473_s21 = int_to_ptr.hbm [resolvable:$true] %s1472_s21 }
 0xbff   :  { %v1003_v37 = vpop.f32.mrf.mxu1 }
 0xc07   :  { %v1005_v49 = vpop.f32.mrf.mxu1 }
 0xc08   :  { %v1691_v38 = vpack.i.bf16 %v1005_v49, %v1003_v37  ;;  %v1714_v49 = vld [vmem:[%s2352_s9 + $0x1] ss:$0 sm:$0xff] }
 0xc0a   :  { %1692 = vrot.lane.b32.xlu1 %v1691_v38, %s2396_s1 }
 0xc41   :  { %v1688_v50 = vpop.permute.xlu1 %1687 }
 0xc42   :  { %v1690_v41 = vunpack.i.h.bf16 %v1688_v50  ;;  %v1689_v42 = vunpack.i.l.bf16 %v1688_v50 }
 0xc44   :  { %v1104_v47 = vsel %vm177_vm8, %v863_v36, %v1690_v41  ;;  %v1103_v48 = vsel %vm177_vm8, %v861_v33, %v1689_v42 }
 0xc66   :  { %v1698_v43 = vpop.permute.xlu0 %1697 }
 0xc67   :  { %v1700_v51 = vunpack.i.h.bf16 %v1698_v43  ;;  %v1699_v52 = vunpack.i.l.bf16 %v1698_v43  ;;  %v1650_v43 = vld [vmem:[%s2355_s12 + $0x38] sm:$0xff] }
 0xc68   :  { %1313 = vmatpush.bf16.msrb.mxu3 %v1650_v43 }
 0xc7c   :  { %v1693_v44 = vpop.permute.xlu1 %1692 }
 0xc7d   :  { %v1695_v45 = vunpack.i.h.bf16 %v1693_v44  ;;  %v1694_v46 = vunpack.i.l.bf16 %v1693_v44  ;;  %v1649_v44 = vld [vmem:[%s2355_s12 + $0x30] sm:$0xff] }
 0xc7e   :  { %1314 = vmatpush.bf16.msrb.mxu3 %v1649_v44 }
 0xc7f   :  { %v1106_v53 = vsel %vm202_vm9, %v1104_v47, %v1695_v45  ;;  %v1105_v54 = vsel %vm202_vm9, %v1103_v48, %v1694_v46  ;;  %v1648_v45 = vld [vmem:[%s2355_s12 + $0x28] sm:$0xff]  ;;  %v1715_v46 = vld [vmem:[%s2354_s11 + $0x1] ss:$0 sm:$0xff] }
 0xc80   :  { %v1108_v55 = vsel %vm487_vm10, %v1106_v53, %v1700_v51  ;;  %v1107_v56 = vsel %vm487_vm10, %v1105_v54, %v1699_v52  ;;  %v1647_v48 = vld [vmem:[%s2355_s12 + $0x20] sm:$0xff] }
 0xc81   :  { %v1109_v58 = vpack.c.bf16 %v1108_v55, %v1107_v56 }
 0xc82   :  { %1315 = vmatpush.bf16.msrb.mxu3 %v1648_v45  ;;  %v1717_v45 = vld [vmem:[%s2357_s14 + $0x1] ss:$0 sm:$0xff] }
 0xc83   :  { %1568 = vmatmul.msk.bf16.vlgmr.msrb.gmra.mxu0 %vm71_vm0, %v1109_v58 }
 0xc86   :  { %1316 = vmatpush.bf16.msrb.mxu3 %v1647_v48  ;;  %v1718_v48 = vld [vmem:[%s2358_s15 + $0x1] ss:$0 sm:$0xff] }
 0xd00   :  { %v1144_v60 = vpop.f32.mrf.mxu0 }
 0xd01   :  { %v1145_v61 = vadd.f32 %v1712_v59, %v1144_v60 }
 0xd03   :  { %v1149_v62 = vadd.f32 %v1145_v61, %v2166_v27 }
 0xd05   :  { %v1155_v63 = vsel %vm71_vm0, %v1149_v62, 0.0 }
 0xd06   :  { %1156 = vadd.xlane.f32.xlu1 %v1155_v63 }
 0xd08   :  { %v1146_v1 = vpop.f32.mrf.mxu0 }
 0xd09   :  { %v1147_v0 = vadd.f32 %v1712_v59, %v1146_v1 }
 0xd0b   :  { %v1150_v2 = vadd.f32 %v1147_v0, %v2168_v28  ;;  %v1646_v28 = vld [vmem:[%s2353_s10 + $0x18] sm:$0xff] }
 0xd0c   :  { %1241 = vmatpush.bf16.msrb.mxu1 %v1646_v28 }
 0xd0d   :  { %v1158_v3 = vsel %vm71_vm0, %v1150_v2, 0.0 }
 0xd0e   :  { %1159 = vadd.xlane.f32.xlu0 %v1158_v3 }
 0xd10   :  { %1242 = vmatpush.bf16.msrb.mxu1 %v1645_v18 }
 0xd79   :  { %v1157_v35 = vpop.xlane.xlu1 %1156 }
 0xd7a   :  { %v1161_v4 = vmul.f32 %v1157_v35, %v1972_v10 }
 0xd7c   :  { %v1163_v5 = vsub.f32 %v1149_v62, %v1161_v4 }
 0xd7e   :  { %v1165_v7 = vmul.f32 %v1163_v5, %v1163_v5 }
 0xd80   :  { %v1167_v8 = vsel %vm71_vm0, %v1165_v7, 0.0 }
 0xd81   :  { %v1160_v9 = vpop.xlane.xlu0 %1159  ;;  %1168 = vadd.xlane.f32.xlu2 %v1167_v8 }
 0xd82   :  { %v1162_v27 = vmul.f32 %v1160_v9, %v1972_v10 }
 0xd84   :  { %v1164_v11 = vsub.f32 %v1150_v2, %v1162_v27 }
 0xd86   :  { %v1166_v13 = vmul.f32 %v1164_v11, %v1164_v11 }
 0xd88   :  { %v1170_v14 = vsel %vm71_vm0, %v1166_v13, 0.0 }
 0xd89   :  { %1171 = vadd.xlane.f32.xlu2 %v1170_v14 }
 0xdf4   :  { %v1169_v15 = vpop.xlane.xlu2 %1168 }
 0xdf5   :  { %v1173_v16 = vmul.f32 %v1169_v15, %v1972_v10 }
 0xdf7   :  { %v1175_v17 = vadd.f32 1e-12, %v1173_v16 }
 0xdf9   :  { %1803 = vrsqrt.f32 %v1175_v17  ;;  %vm1183_vm9 = vweird.f32 %v1175_v17 }
 0xdfc   :  { %v1172_v6 = vpop.xlane.xlu2 %1171 }
 0xdfd   :  { %v1174_v19 = vmul.f32 %v1172_v6, %v1972_v10 }
 0xdff   :  { %v1804_v20 = vpop.eup %1803  ;;  %v1176_v21 = vadd.f32 1e-12, %v1174_v19 }
 0xe00   :  { %v1178_v22 = vmul.f32 %v1804_v20, %v1175_v17  ;;  %vm1184_vm8 = vweird.f32 %v1804_v20 }
 0xe01   :  { %1805 = vrsqrt.f32 %v1176_v21  ;;  %vm1185_vm10 = vmor %vm1183_vm9, %vm1184_vm8  ;;  %vm1193_vm13 = vweird.f32 %v1176_v21 }
 0xe02   :  { %v1179_v23 = vmul.f32 %v1804_v20, %v1178_v22 }
 0xe04   :  { %v1180_v24 = vmul.f32 0.5, %v1179_v23 }
 0xe06   :  { %v1181_v25 = vsub.f32 1.5, %v1180_v24 }
 0xe07   :  { %v1806_v26 = vpop.eup %1805 }
 0xe08   :  { %v1182_v29 = vmul.f32 %v1804_v20, %v1181_v25  ;;  %v1188_v30 = vmul.f32 %v1806_v26, %v1176_v21  ;;  %vm1194_vm12 = vweird.f32 %v1806_v26 }
 0xe09   :  { %vm1195_vm14 = vmor %vm1193_vm13, %vm1194_vm12 }
 0xe0a   :  { %v1189_v12 = vmul.f32 %v1806_v26, %v1188_v30  ;;  %v1186_v31 = vsel %vm1185_vm10, %v1804_v20, %v1182_v29 }
 0xe0b   :  { %v1197_v57 = vmul.f32 %v1186_v31, %v1163_v5 }
 0xe0c   :  { %v1190_v32 = vmul.f32 0.5, %v1189_v12  ;;  %v1652_v12 = vld [vmem:[%s2359_s16 + $0x8] sm:$0xff] }
 0xe0d   :  { %v1202_v38 = vmul.f32 %v1713_v34, %v1197_v57  ;;  %1418 = vmatpush.bf16.msra.mxu2 %v1652_v12 }
 0xe0e   :  { %v1191_v33 = vsub.f32 1.5, %v1190_v32 }
 0xe0f   :  { %v1207_v50 = vadd.f32 %v1714_v49, %v1202_v38 }
 0xe10   :  { %v1192_v36 = vmul.f32 %v1806_v26, %v1191_v33  ;;  %v1651_v33 = vld [vmem:[%s2359_s16] sm:$0xff] }
 0xe11   :  { %1419 = vmatpush.bf16.msra.mxu2 %v1651_v33 }
 0xe12   :  { %v1196_v37 = vsel %vm1195_vm14, %v1806_v26, %v1192_v36 }
 0xe13   :  { %v1198_v39 = vmul.f32 %v1196_v37, %v1164_v11  ;;  %v1716_v11 = vld [vmem:[%s2356_s13 + $0x1] ss:$0 sm:$0xff] }
 0xe15   :  { %v1203_v40 = vmul.f32 %v1713_v34, %v1198_v39 }
 0xe17   :  { %v1208_v41 = vadd.f32 %v1714_v49, %v1203_v40 }
 0xe19   :  { %v1209_v42 = vpack.c.bf16 %v1208_v41, %v1207_v50 }
 0xe1b   :  { %1584 = vmatmul.msk.bf16.vlgmr.msrb.gmra.mxu1 %vm71_vm0, %v1209_v42 }
 0xe98   :  { %v1244_v47 = vpop.f32.mrf.mxu1 }
 0xe99   :  { %v1245_v51 = vadd.f32 %v1715_v46, %v1244_v47 }
 0xe9b   :  { %v1249_v52 = vmul.f32 %v1245_v51, %v1245_v51 }
 0xe9d   :  { %v1251_v53 = vmul.f32 %v1249_v52, %v1245_v51 }
 0xe9f   :  { %v1253_v54 = vmul.f32 0.044715, %v1251_v53 }
 0xea0   :  { %v1246_v55 = vpop.f32.mrf.mxu1 }
 0xea1   :  { %v1255_v56 = vadd.f32 %v1253_v54, %v1245_v51  ;;  %v1247_v58 = vadd.f32 %v1715_v46, %v1246_v55 }
 0xea3   :  { %v1257_v59 = vmul.f32 0.7978846, %v1255_v56  ;;  %v1250_v60 = vmul.f32 %v1247_v58, %v1247_v58 }
 0xea5   :  { %v1252_v61 = vmul.f32 %v1250_v60, %v1247_v58  ;;  %1807 = vtanh.f32 %v1257_v59 }
 0xea7   :  { %v1254_v62 = vmul.f32 0.044715, %v1252_v61 }
 0xea9   :  { %v1256_v63 = vadd.f32 %v1254_v62, %v1247_v58  ;;  %v1654_v62 = vld [vmem:[%s2361_s18 + $0x8] sm:$0xff] }
 0xeaa   :  { %1456 = vmatpush.bf16.msra.mxu0 %v1654_v62 }
 0xeab   :  { %v1258_v1 = vmul.f32 0.7978846, %v1256_v63  ;;  %v1808_v0 = vpop.eup %1807  ;;  %v1653_v63 = vld [vmem:[%s2361_s18] sm:$0xff] }
 0xeac   :  { %v1261_v2 = vadd.f32 1.0, %v1808_v0 }
 0xead   :  { %1809 = vtanh.f32 %v1258_v1  ;;  %v1719_v1 = vld [vmem:[%s2360_s17] ss:$0 sm:$0xff] }
 0xeae   :  { %v1263_v35 = vmul.f32 0.5, %v1261_v2  ;;  %1457 = vmatpush.bf16.msra.mxu0 %v1653_v63 }
 0xeb0   :  { %v1265_v7 = vmul.f32 %v1263_v35, %v1245_v51 }
 0xeb3   :  { %v1810_v3 = vpop.eup %1809 }
 0xeb4   :  { %v1262_v4 = vadd.f32 1.0, %v1810_v3 }
 0xeb6   :  { %v1264_v5 = vmul.f32 0.5, %v1262_v4 }
 0xeb8   :  { %v1266_v8 = vmul.f32 %v1264_v5, %v1247_v58  ;;  %v1720_v5 = vld [vmem:[%s2362_s19] ss:$0 sm:$0xff] }
 0xeba   :  { %v1267_v9 = vpack.c.bf16 %v1266_v8, %v1265_v7 }
 0xebc   :  { %1610 = vmatmul.msk.bf16.vlgmr.msrb.gmra.mxu3 %vm679_vm2, %v1267_v9 }
 0xf3f   :  { %v1318_v27 = vpop.f32.mrf.mxu3 }
 0xf40   :  { %v1319_v15 = vadd.f32 %v1716_v11, %v1318_v27 }
 0xf42   :  { %v1323_v17 = vadd.f32 %v1319_v15, %v1207_v50 }
 0xf44   :  { %v1329_v18 = vsel %vm71_vm0, %v1323_v17, 0.0 }
 0xf47   :  { %v1320_v13 = vpop.f32.mrf.mxu3 }
 0xf48   :  { %v1321_v14 = vadd.f32 %v1716_v11, %v1320_v13 }
 0xf4a   :  { %v1324_v28 = vadd.f32 %v1321_v14, %v1208_v41 }
 0xf4c   :  { %v1332_v16 = vsel %vm71_vm0, %v1324_v28, 0.0 }
 0xf4d   :  { %1333 = vadd.xlane.f32.xlu2 %v1332_v16 }
 0xf55   :  { %1330 = vadd.xlane.f32.xlu2 %v1329_v18 }
 0xfc0   :  { %v1334_v6 = vpop.xlane.xlu2 %1333 }
 0xfc1   :  { %v1336_v19 = vmul.f32 %v1334_v6, %v1972_v10 }
 0xfc3   :  { %v1338_v20 = vsub.f32 %v1324_v28, %v1336_v19 }
 0xfc5   :  { %v1340_v21 = vmul.f32 %v1338_v20, %v1338_v20 }
 0xfc7   :  { %v1344_v22 = vsel %vm71_vm0, %v1340_v21, 0.0 }
 0xfc8   :  { %1345 = vadd.xlane.f32.xlu1 %v1344_v22  ;;  %v1331_v23 = vpop.xlane.xlu2 %1330 }
 0xfc9   :  { %v1335_v24 = vmul.f32 %v1331_v23, %v1972_v10 }
 0xfcb   :  { %v1337_v25 = vsub.f32 %v1323_v17, %v1335_v24 }
 0xfcd   :  { %v1339_v26 = vmul.f32 %v1337_v25, %v1337_v25 }
 0xfcf   :  { %v1341_v29 = vsel %vm71_vm0, %v1339_v26, 0.0 }
 0xfd0   :  { %1342 = vadd.xlane.f32.xlu2 %v1341_v29 }
0x103b   :  { %v1346_v30 = vpop.xlane.xlu1 %1345 }
0x103c   :  { %v1348_v31 = vmul.f32 %v1346_v30, %v1972_v10 }
0x103e   :  { %v1350_v32 = vadd.f32 1e-12, %v1348_v31 }
0x1040   :  { %1811 = vrsqrt.f32 %v1350_v32  ;;  %vm1367_vm1 = vweird.f32 %v1350_v32 }
0x1043   :  { %v1343_v34 = vpop.xlane.xlu2 %1342 }
0x1044   :  { %v1347_v57 = vmul.f32 %v1343_v34, %v1972_v10 }
0x1046   :  { %v1812_v36 = vpop.eup %1811  ;;  %v1349_v37 = vadd.f32 1e-12, %v1347_v57 }
0x1047   :  { %v1362_v49 = vmul.f32 %v1812_v36, %v1350_v32  ;;  %vm1368_vm15 = vweird.f32 %v1812_v36 }
0x1048   :  { %1813 = vrsqrt.f32 %v1349_v37  ;;  %vm1369_vm2 = vmor %vm1367_vm1, %vm1368_vm15  ;;  %vm1357_vm4 = vweird.f32 %v1349_v37 }
0x1049   :  { %v1363_v38 = vmul.f32 %v1812_v36, %v1362_v49 }
0x104b   :  { %v1364_v39 = vmul.f32 0.5, %v1363_v38 }
0x104d   :  { %v1365_v40 = vsub.f32 1.5, %v1364_v39 }
0x104e   :  { %v1814_v50 = vpop.eup %1813 }
0x104f   :  { %v1366_v41 = vmul.f32 %v1812_v36, %v1365_v40  ;;  %v1352_v42 = vmul.f32 %v1814_v50, %v1349_v37  ;;  %vm1358_vm3 = vweird.f32 %v1814_v50 }
0x1050   :  { %vm1359_vm5 = vmor %vm1357_vm4, %vm1358_vm3 }
0x1051   :  { %v1370_v43 = vsel %vm1369_vm2, %v1812_v36, %v1366_v41  ;;  %v1353_v44 = vmul.f32 %v1814_v50, %v1352_v42 }
0x1052   :  { %v1372_v10 = vmul.f32 %v1370_v43, %v1338_v20 }
0x1053   :  { %v1354_v46 = vmul.f32 0.5, %v1353_v44 }
0x1054   :  { %v1377_v51 = vmul.f32 %v1717_v45, %v1372_v10 }
0x1055   :  { %v1355_v47 = vsub.f32 1.5, %v1354_v46 }
0x1056   :  { %v1382_v54 = vadd.f32 %v1718_v48, %v1377_v51 }
0x1057   :  { %v1356_v52 = vmul.f32 %v1814_v50, %v1355_v47 }
0x1058   :  { %v1384_v58 = vrot.slane %v1382_v54, 7 }
0x1059   :  { %v1360_v53 = vsel %vm1359_vm5, %v1814_v50, %v1356_v52 }
0x105a   :  { %v1371_v55 = vmul.f32 %v1360_v53, %v1337_v25 }
0x105c   :  { %v1376_v56 = vmul.f32 %v1717_v45, %v1371_v55 }
0x105e   :  { %v1381_v59 = vadd.f32 %v1718_v48, %v1376_v56 }
0x1060   :  { %v1387_v60 = vsel %vm1386_vm6, %v1381_v59, %v1384_v58 }
0x1061   :  { %v1388_v61 = vpack.c.bf16 %v1387_v60, %v1387_v60 }
0x1063   :  { %1621 = vmatmul.msk.bf16.vlgmr.msra.gmra.mxu2 %vm71_vm0, %v1388_v61 }
0x10e6   :  { %v1421_v0 = vpop.f32.mrf.mxu2 }
0x10e7   :  { %v1422_v2 = vadd.f32 %v1719_v1, %v1421_v0 }
0x10e9   :  { %1815 = vtanh.f32 %v1422_v2 }
0x10ee   :  { %v1423_v3 = vpop.f32.mrf.mxu2 }
0x10ef   :  { %v1816_v35 = vpop.eup %1815 }
0x10f0   :  { %v1426_v4 = vpack.c.bf16 %v1816_v35, %v1816_v35 }
0x10f2   :  { %1630 = vmatmul.msk.bf16.vlgmr.msra.gmra.mxu0 %vm71_vm0, %v1426_v4 }
0x116f   :  { %v1459_v7 = vpop.f32.mrf.mxu0 }
0x1170   :  { %v1460_v8 = vadd.f32 %v1720_v5, %v1459_v7 }
0x1172   :  { %1464 = vst.msk [vmem:[#allocation2] sm:$0x3] %vm1463_vm7, %v1460_v8 }
0x1173   :  { %1475 = dma.vmem_to_hbm [thread:$0]  %s1471_s8, 32, %s1473_s21, [#allocation3]  }
0x1177   :  { %v1461_v9 = vpop.f32.mrf.mxu0 }
0x1178   :  { %1841 = dma.done.wait [#allocation3], 32  }
0x1179   :  { %1842 = vsyncadd [#allocation3], 4294967264 }
0x117a   :  { %1480 = vsyncpa [#allocation3], 1 }

</bundles_post_ra>
